<compile_context>
chip_gen: v5e
topology: v5e:2x2
jax: 0.10.0
libtpu: 0.0.40
codegen_flags: <defaults>
</compile_context>

<pallas_src>
import functools

import numpy as np
import jax
import jax.numpy as jnp
from jax import lax
from jax.experimental import pallas as pl
from jax.experimental.pallas import tpu as pltpu

_VMEM_LIMIT = 32 * 1024 * 1024


# ----------------------------------------------------------------------------- helpers

def make_sinusoid_table(n_position: int, d_hid: int) -> jnp.ndarray:
    """Sinusoid encoding table, shape (n_position, d_hid), f32 (matches the PyTorch buffer)."""
    pos = np.arange(n_position, dtype=np.float64)[:, None]
    hid = np.arange(d_hid, dtype=np.float64)[None, :]
    table = pos / np.power(10000.0, 2.0 * (hid // 2) / d_hid)
    table[:, 0::2] = np.sin(table[:, 0::2])
    table[:, 1::2] = np.cos(table[:, 1::2])
    return jnp.asarray(table, dtype=jnp.float32)


def _row_tile(R: int, target: int = 512) -> int:
    """Largest multiple-of-8 divisor of R that is <= target, preferring >= 2 grid steps."""
    if R <= 8:
        return R
    cap = min(target, R // 2 if R >= 16 else R)
    cap = max(8, (cap // 8) * 8)
    t = cap
    while t >= 8:
        if R % t == 0:
            return t
        t -= 8
    return R


def _layernorm(y, g, b, eps):
    mu = jnp.mean(y, axis=-1, keepdims=True)
    d = y - mu
    var = jnp.mean(d * d, axis=-1, keepdims=True)
    return d * lax.rsqrt(var + eps) * g + b


# ----------------------------------------------------------------------------- kernels

def _mha_body(h, wqkv_ref, bqkv_ref, wfc_ref, bfc_ref, mask_ref, g_ref, bt_ref, o_ref,
              *, n_head, d_k, d_v, scale, eps):
    # h: (S, D) f32 (already includes the positional encoding for layer 0).
    h_lo = h.astype(jnp.bfloat16)
    # Fused QKV projection: (S, D) @ (D, H*(2dk+dv)) -> f32 accumulation.
    qkv = jnp.dot(h_lo, wqkv_ref[...], preferred_element_type=jnp.float32) + bqkv_ref[...]
    hk = n_head * d_k
    mask_add = mask_ref[...]                      # (1, S) additive key mask (0 / -1e9)

    heads = []
    for hd in range(n_head):                      # unrolled; heads stay in VMEM/vregs
        q = (qkv[:, hd * d_k:(hd + 1) * d_k] * scale).astype(jnp.bfloat16)
        k = qkv[:, hk + hd * d_k: hk + (hd + 1) * d_k].astype(jnp.bfloat16)
        v = qkv[:, 2 * hk + hd * d_v: 2 * hk + (hd + 1) * d_v].astype(jnp.bfloat16)
        # Contract on d_k directly (no explicit transpose of k).
        s = lax.dot_general(q, k, (((1,), (1,)), ((), ())),
                            preferred_element_type=jnp.float32)
        s = s + mask_add                          # broadcast over query rows
        s = s - jnp.max(s, axis=-1, keepdims=True)
        p = jnp.exp(s)
        p = p * pl.reciprocal(jnp.sum(p, axis=-1, keepdims=True), approx=True)
        heads.append(jnp.dot(p.astype(jnp.bfloat16), v,
                             preferred_element_type=jnp.float32))
    ao = jnp.concatenate(heads, axis=-1).astype(jnp.bfloat16)   # (S, H*d_v)

    # Output projection + residual + LayerNorm (all fused, never hits HBM).
    y = jnp.dot(ao, wfc_ref[...], preferred_element_type=jnp.float32) + bfc_ref[...] + h
    o_ref[...] = _layernorm(y, g_ref[...], bt_ref[...], eps).astype(o_ref.dtype)


def _mha_kernel(x_ref, wqkv_ref, bqkv_ref, wfc_ref, bfc_ref, mask_ref, g_ref, bt_ref,
                o_ref, *, n_head, d_k, d_v, scale, eps):
    _mha_body(x_ref[...], wqkv_ref, bqkv_ref, wfc_ref, bfc_ref, mask_ref, g_ref, bt_ref,
              o_ref, n_head=n_head, d_k=d_k, d_v=d_v, scale=scale, eps=eps)


def _mha_pe_kernel(x_ref, pe_ref, wqkv_ref, bqkv_ref, wfc_ref, bfc_ref, mask_ref, g_ref,
                   bt_ref, o_ref, *, n_head, d_k, d_v, scale, eps):
    _mha_body(x_ref[...] + pe_ref[...], wqkv_ref, bqkv_ref, wfc_ref, bfc_ref, mask_ref,
              g_ref, bt_ref, o_ref, n_head=n_head, d_k=d_k, d_v=d_v, scale=scale, eps=eps)


def _ffn_kernel(x_ref, w1_ref, b1_ref, w2_ref, b2_ref, g_ref, bt_ref, o_ref, *, eps):
    x = x_ref[...]
    h = jnp.dot(x.astype(jnp.bfloat16), w1_ref[...],
                preferred_element_type=jnp.float32) + b1_ref[...]
    h = jnp.maximum(h, 0.0)
    y = jnp.dot(h.astype(jnp.bfloat16), w2_ref[...],
                preferred_element_type=jnp.float32) + b2_ref[...] + x
    o_ref[...] = _layernorm(y, g_ref[...], bt_ref[...], eps).astype(o_ref.dtype)


def _ln_kernel(x_ref, g_ref, bt_ref, o_ref, *, eps):
    o_ref[...] = _layernorm(x_ref[...], g_ref[...], bt_ref[...], eps).astype(o_ref.dtype)


# ----------------------------------------------------------------------------- wrappers

def mha_block(h, pe, mask_add, w_qkv, b_qkv, w_fc, b_fc, gamma, beta,
              *, n_head, d_k, d_v, eps):
    """Fused multi-head attention block: LN1(fc(SDPA(QKV(h+pe))) + (h+pe)).

    h: (B, S, D) f32; pe: (S, D) f32 or None; mask_add: (B, 1, S) f32 additive mask;
    w_qkv: (D, H*(2dk+dv)) bf16; w_fc: (H*dv, D) bf16; biases / LN params f32.
    """
    B, S, D = h.shape
    d_qkv = w_qkv.shape[1]
    scale = 1.0 / float(np.sqrt(d_k))

    add_pe = pe is not None
    kern = functools.partial(_mha_pe_kernel if add_pe else _mha_kernel,
                             n_head=n_head, d_k=d_k, d_v=d_v, scale=scale, eps=eps)

    in_specs = [pl.BlockSpec((None, S, D), lambda b: (b, 0, 0))]   # x slab (batch squeezed)
    args = [h]
    if add_pe:
        in_specs.append(pl.BlockSpec((S, D), lambda b: (0, 0)))    # PE: constant over batch
        args.append(pe)
    in_specs += [
        pl.BlockSpec((D, d_qkv), lambda b: (0, 0)),                # w_qkv (resident)
        pl.BlockSpec((1, d_qkv), lambda b: (0, 0)),                # b_qkv
        pl.BlockSpec((n_head * d_v, D), lambda b: (0, 0)),         # w_fc (resident)
        pl.BlockSpec((1, D), lambda b: (0, 0)),                    # b_fc
        pl.BlockSpec((None, 1, S), lambda b: (b, 0, 0)),           # additive key mask
        pl.BlockSpec((1, D), lambda b: (0, 0)),                    # ln gamma
        pl.BlockSpec((1, D), lambda b: (0, 0)),                    # ln beta
    ]
    args += [w_qkv, b_qkv.reshape(1, d_qkv), w_fc, b_fc.reshape(1, D),
             mask_add, gamma.reshape(1, D), beta.reshape(1, D)]

    return pl.pallas_call(
        kern,
        out_shape=jax.ShapeDtypeStruct((B, S, D), jnp.float32),
        grid_spec=pltpu.PrefetchScalarGridSpec(
            num_scalar_prefetch=0,
            grid=(B,),
            in_specs=in_specs,
            out_specs=pl.BlockSpec((None, S, D), lambda b: (b, 0, 0)),
        ),
        compiler_params=pltpu.CompilerParams(
            dimension_semantics=("parallel",),
            vmem_limit_bytes=_VMEM_LIMIT,
        ),
    )(*args)


def ffn_add_layernorm(x, w1, b1, w2, b2, gamma, beta, *, eps):
    """LN2(w2(relu(w1 x)) + x); x: (R, D); w1: (D, Dh) bf16; w2: (Dh, D) bf16."""
    R, D = x.shape
    Dh = w1.shape[1]
    tr = _row_tile(R)
    kern = functools.partial(_ffn_kernel, eps=eps)
    return pl.pallas_call(
        kern,
        out_shape=jax.ShapeDtypeStruct((R, D), x.dtype),
        grid_spec=pltpu.PrefetchScalarGridSpec(
            num_scalar_prefetch=0,
            grid=(R // tr,),
            in_specs=[
                pl.BlockSpec((tr, D), lambda r: (r, 0)),
                pl.BlockSpec((D, Dh), lambda r: (0, 0)),
                pl.BlockSpec((1, Dh), lambda r: (0, 0)),
                pl.BlockSpec((Dh, D), lambda r: (0, 0)),
                pl.BlockSpec((1, D), lambda r: (0, 0)),
                pl.BlockSpec((1, D), lambda r: (0, 0)),
                pl.BlockSpec((1, D), lambda r: (0, 0)),
            ],
            out_specs=pl.BlockSpec((tr, D), lambda r: (r, 0)),
        ),
        compiler_params=pltpu.CompilerParams(
            dimension_semantics=("parallel",),
            vmem_limit_bytes=_VMEM_LIMIT,
        ),
    )(x, w1, b1.reshape(1, Dh), w2, b2.reshape(1, D),
      gamma.reshape(1, D), beta.reshape(1, D))


def layernorm(x, gamma, beta, *, eps):
    R, D = x.shape
    tr = _row_tile(R)
    kern = functools.partial(_ln_kernel, eps=eps)
    return pl.pallas_call(
        kern,
        out_shape=jax.ShapeDtypeStruct((R, D), x.dtype),
        grid_spec=pltpu.PrefetchScalarGridSpec(
            num_scalar_prefetch=0,
            grid=(R // tr,),
            in_specs=[
                pl.BlockSpec((tr, D), lambda r: (r, 0)),
                pl.BlockSpec((1, D), lambda r: (0, 0)),
                pl.BlockSpec((1, D), lambda r: (0, 0)),
            ],
            out_specs=pl.BlockSpec((tr, D), lambda r: (r, 0)),
        ),
        compiler_params=pltpu.CompilerParams(dimension_semantics=("parallel",)),
    )(x, gamma.reshape(1, D), beta.reshape(1, D))


# ----------------------------------------------------------------------------- forward

def encode_transformer_forward(x, mask_add, pos_table, params, *, n_head, d_k, d_v):
    """x: (B, S, d_model) f32; mask_add: (B, 1, S) f32 additive key mask (0 / -1e9);
    pos_table: (n_position, d_model) f32; params: see prepare_params()."""
    B, S, D = x.shape
    R = B * S
    pe = pos_table[:S]
    # dropout(p=0.1): identity at inference
    h = x
    for li, lp in enumerate(params["layers"]):
        # ---- MultiHeadAttention (QKV + SDPA + out-proj + residual + LN, one kernel) ----
        h = mha_block(h, pe if li == 0 else None, mask_add,
                      lp["w_qkv"], lp["b_qkv"], lp["w_fc"], lp["b_fc"],
                      lp["ln1_g"], lp["ln1_b"],
                      n_head=n_head, d_k=d_k, d_v=d_v, eps=1e-5)
        # ---- PositionwiseFeedForward (w1/relu/w2 + residual + LN, one kernel) ----------
        h = ffn_add_layernorm(h.reshape(R, D), lp["w1"], lp["b1"], lp["w2"], lp["b2"],
                              lp["ln2_g"], lp["ln2_b"], eps=1e-5).reshape(B, S, D)
    out = layernorm(h.reshape(R, D), params["ln_f_g"], params["ln_f_b"], eps=1e-6)
    return out.reshape(B, S, D)


# ----------------------------------------------------------------------------- params & reference

def init_params(key, d_model, n_head, d_k, d_v, d_inner, n_layers):
    def nrm(k, shape, std):
        return std * jax.random.normal(k, shape, dtype=jnp.float32)

    keys = jax.random.split(key, n_layers + 1)
    layers = []
    for li in range(n_layers):
        ks = jax.random.split(keys[li], 12)
        d_qkv = n_head * (2 * d_k + d_v)
        layers.append(dict(
            w_qkv=nrm(ks[0], (d_model, d_qkv), (2.0 / (d_model + d_k)) ** 0.5),
            b_qkv=nrm(ks[1], (d_qkv,), 0.02),
            w_fc=nrm(ks[2], (n_head * d_v, d_model), (2.0 / (n_head * d_v + d_model)) ** 0.5),
            b_fc=nrm(ks[3], (d_model,), 0.02),
            ln1_g=1.0 + nrm(ks[4], (d_model,), 0.05),
            ln1_b=nrm(ks[5], (d_model,), 0.05),
            w1=nrm(ks[6], (d_model, d_inner), (2.0 / (d_model + d_inner)) ** 0.5),
            b1=nrm(ks[7], (d_inner,), 0.02),
            w2=nrm(ks[8], (d_inner, d_model), (2.0 / (d_model + d_inner)) ** 0.5),
            b2=nrm(ks[9], (d_model,), 0.02),
            ln2_g=1.0 + nrm(ks[10], (d_model,), 0.05),
            ln2_b=nrm(ks[11], (d_model,), 0.05),
        ))
    kf = jax.random.split(keys[-1], 2)
    return dict(layers=layers,
                ln_f_g=1.0 + nrm(kf[0], (d_model,), 0.05),
                ln_f_b=nrm(kf[1], (d_model,), 0.05))


def prepare_params(params):
    """Pre-cast matmul weights to bf16 (done once, outside jit); everything else stays f32."""
    def cast_layer(lp):
        lp = dict(lp)
        for k in ("w_qkv", "w_fc", "w1", "w2"):
            lp[k] = lp[k].astype(jnp.bfloat16)
        return lp
    return dict(layers=[cast_layer(lp) for lp in params["layers"]],
                ln_f_g=params["ln_f_g"], ln_f_b=params["ln_f_b"])


def _ln_ref(x, g, b, eps):
    mu = jnp.mean(x, axis=-1, keepdims=True)
    var = jnp.mean((x - mu) ** 2, axis=-1, keepdims=True)
    return (x - mu) / jnp.sqrt(var + eps) * g + b


def reference_forward(x, mask_bool, pos_table, params, *, n_head, d_k, d_v):
    HI = lax.Precision.HIGHEST
    B, S, D = x.shape
    R = B * S
    h = x + pos_table[:S][None, :, :]
    for lp in params["layers"]:
        h2 = h.reshape(R, D)
        qkv = jnp.dot(h2, lp["w_qkv"], precision=HI) + lp["b_qkv"]
        hk, hv = n_head * d_k, n_head * d_v
        q = qkv[:, :hk].reshape(B, S, n_head, d_k).transpose(0, 2, 1, 3)
        k = qkv[:, hk:2 * hk].reshape(B, S, n_head, d_k).transpose(0, 2, 1, 3)
        v = qkv[:, 2 * hk:].reshape(B, S, n_head, d_v).transpose(0, 2, 1, 3)
        scores = jnp.einsum("bhqd,bhkd->bhqk", q, k, precision=HI) / np.sqrt(d_k)
        scores = jnp.where(mask_bool[:, None, :, :], -1e9, scores)
        p = jax.nn.softmax(scores, axis=-1)
        ao = jnp.einsum("bhqk,bhkd->bhqd", p, v, precision=HI)
        ao = ao.transpose(0, 2, 1, 3).reshape(R, hv)
        y = jnp.dot(ao, lp["w_fc"], precision=HI) + lp["b_fc"] + h2
        y = _ln_ref(y, lp["ln1_g"], lp["ln1_b"], 1e-5)
        hh = jnp.maximum(jnp.dot(y, lp["w1"], precision=HI) + lp["b1"], 0.0)
        z = jnp.dot(hh, lp["w2"], precision=HI) + lp["b2"] + y
        z = _ln_ref(z, lp["ln2_g"], lp["ln2_b"], 1e-5)
        h = z.reshape(B, S, D)
    out = _ln_ref(h.reshape(R, D), params["ln_f_g"], params["ln_f_b"], 1e-6)
    return out.reshape(B, S, D)


# ----------------------------------------------------------------------------- main

if __name__ == "__main__":
    B, S = 2, 8
    d_model = 128            # lane-dense (multiple of 128)
    n_head, d_k, d_v = 2, 64, 64
    d_inner = 256
    n_layers = 2
    n_position = 64

    key = jax.random.PRNGKey(0)
    k_x, k_p = jax.random.split(key)
    x = jax.random.normal(k_x, (B, S, d_model), dtype=jnp.float32)

    # Key-padding mask: batch 1 masks its last two key positions (True = masked).
    key_pad = jnp.zeros((B, S), dtype=bool).at[1, S - 2:].set(True)
    mask_bool = jnp.broadcast_to(key_pad[:, None, :], (B, S, S))      # reference (bool)
    mask_add = (key_pad.astype(jnp.float32) * -1e9)[:, None, :]       # kernel (B, 1, S) additive

    pos_table = make_sinusoid_table(n_position, d_model)
    params_f32 = init_params(k_p, d_model, n_head, d_k, d_v, d_inner, n_layers)
    params_lo = prepare_params(params_f32)      # bf16 matmul weights, cast once outside jit

    fwd = jax.jit(functools.partial(encode_transformer_forward,
                                    n_head=n_head, d_k=d_k, d_v=d_v))
    out = fwd(x, mask_add, pos_table, params_lo)
    out = jax.block_until_ready(out)

    ref = reference_forward(x, mask_bool, pos_table, params_f32,
                            n_head=n_head, d_k=d_k, d_v=d_v)
    np.testing.assert_allclose(np.asarray(out), np.asarray(ref), rtol=5e-2, atol=5e-2)

    print("KERNEL_OK")
</pallas_src>

<mosaic_0001>
module attributes {stable_mosaic.version = 11 : i64} {
  func.func @_ffn_kernel(%arg0: i32, %arg1: memref<8x128xf32, #tpu.memory_space<vmem>>, %arg2: memref<128x256xbf16, #tpu.memory_space<vmem>>, %arg3: memref<1x256xf32, #tpu.memory_space<vmem>>, %arg4: memref<256x128xbf16, #tpu.memory_space<vmem>>, %arg5: memref<1x128xf32, #tpu.memory_space<vmem>>, %arg6: memref<1x128xf32, #tpu.memory_space<vmem>>, %arg7: memref<1x128xf32, #tpu.memory_space<vmem>>, %arg8: memref<8x128xf32, #tpu.memory_space<vmem>>) attributes {dimension_semantics = [#tpu.dimension_semantics<parallel>], iteration_bounds = array<i64: 2>, scalar_prefetch = 0 : i64, scratch_operands = 0 : i64, tpu.core_type = #tpu.core_type<tc>, window_params = [{transform_indices = @transform_0, window_bounds = array<i64: 8, 128>}, {pipeline_mode = #tpu.pipeline_mode<synchronous>, transform_indices = @transform_1, window_bounds = array<i64: 128, 256>}, {pipeline_mode = #tpu.pipeline_mode<synchronous>, transform_indices = @transform_2, window_bounds = array<i64: 1, 256>}, {pipeline_mode = #tpu.pipeline_mode<synchronous>, transform_indices = @transform_3, window_bounds = array<i64: 256, 128>}, {pipeline_mode = #tpu.pipeline_mode<synchronous>, transform_indices = @transform_4, window_bounds = array<i64: 1, 128>}, {pipeline_mode = #tpu.pipeline_mode<synchronous>, transform_indices = @transform_5, window_bounds = array<i64: 1, 128>}, {pipeline_mode = #tpu.pipeline_mode<synchronous>, transform_indices = @transform_6, window_bounds = array<i64: 1, 128>}, {transform_indices = @transform_7, window_bounds = array<i64: 8, 128>}]} {
    %c0 = arith.constant 0 : index
    %c0_0 = arith.constant 0 : index
    %0 = vector.load %arg1[%c0, %c0_0] : memref<8x128xf32, #tpu.memory_space<vmem>>, vector<8x128xf32>
    %1 = arith.truncf %0 : vector<8x128xf32> to vector<8x128xbf16>
    %c0_1 = arith.constant 0 : index
    %c0_2 = arith.constant 0 : index
    %2 = vector.load %arg2[%c0_1, %c0_2] : memref<128x256xbf16, #tpu.memory_space<vmem>>, vector<128x256xbf16>
    %cst = arith.constant dense<0.000000e+00> : vector<8x256xf32>
    %3 = tpu.matmul %1, %2, %cst {dimension_numbers = #tpu.dot_dimension_numbers<[1], [0], [0], [1], [0, 0, 1, 1], [], []>} : vector<8x128xbf16>, vector<128x256xbf16>, vector<8x256xf32> -> vector<8x256xf32>
    %c0_3 = arith.constant 0 : index
    %c0_4 = arith.constant 0 : index
    %4 = vector.load %arg3[%c0_3, %c0_4] : memref<1x256xf32, #tpu.memory_space<vmem>>, vector<1x256xf32>
    %5 = vector.broadcast %4 : vector<1x256xf32> to vector<8x256xf32>
    %6 = arith.addf %3, %5 : vector<8x256xf32>
    %cst_5 = arith.constant 0.000000e+00 : f32
    %7 = vector.broadcast %cst_5 : f32 to vector<8x256xf32>
    %8 = arith.maximumf %6, %7 : vector<8x256xf32>
    %9 = arith.truncf %8 : vector<8x256xf32> to vector<8x256xbf16>
    %c0_6 = arith.constant 0 : index
    %c0_7 = arith.constant 0 : index
    %10 = vector.load %arg4[%c0_6, %c0_7] : memref<256x128xbf16, #tpu.memory_space<vmem>>, vector<256x128xbf16>
    %cst_8 = arith.constant dense<0.000000e+00> : vector<8x128xf32>
    %11 = tpu.matmul %9, %10, %cst_8 {dimension_numbers = #tpu.dot_dimension_numbers<[1], [0], [0], [1], [0, 0, 1, 1], [], []>} : vector<8x256xbf16>, vector<256x128xbf16>, vector<8x128xf32> -> vector<8x128xf32>
    %c0_9 = arith.constant 0 : index
    %c0_10 = arith.constant 0 : index
    %12 = vector.load %arg5[%c0_9, %c0_10] : memref<1x128xf32, #tpu.memory_space<vmem>>, vector<1x128xf32>
    %13 = vector.broadcast %12 : vector<1x128xf32> to vector<8x128xf32>
    %14 = arith.addf %11, %13 : vector<8x128xf32>
    %15 = arith.addf %14, %0 : vector<8x128xf32>
    %c0_11 = arith.constant 0 : index
    %c0_12 = arith.constant 0 : index
    %16 = vector.load %arg6[%c0_11, %c0_12] : memref<1x128xf32, #tpu.memory_space<vmem>>, vector<1x128xf32>
    %c0_13 = arith.constant 0 : index
    %c0_14 = arith.constant 0 : index
    %17 = vector.load %arg7[%c0_13, %c0_14] : memref<1x128xf32, #tpu.memory_space<vmem>>, vector<1x128xf32>
    %cst_15 = arith.constant dense<0.000000e+00> : vector<8xf32>
    %18 = vector.multi_reduction <add>, %15, %cst_15 [1] : vector<8x128xf32> to vector<8xf32>
    %19 = vector.shape_cast %18 : vector<8xf32> to vector<8x1xf32>
    %cst_16 = arith.constant 1.280000e+02 : f32
    %20 = vector.broadcast %cst_16 : f32 to vector<8x1xf32>
    %21 = arith.divf %19, %20 : vector<8x1xf32>
    %22 = vector.broadcast %21 : vector<8x1xf32> to vector<8x128xf32>
    %23 = arith.subf %15, %22 : vector<8x128xf32>
    %24 = arith.mulf %23, %23 : vector<8x128xf32>
    %cst_17 = arith.constant dense<0.000000e+00> : vector<8xf32>
    %25 = vector.multi_reduction <add>, %24, %cst_17 [1] : vector<8x128xf32> to vector<8xf32>
    %26 = vector.shape_cast %25 : vector<8xf32> to vector<8x1xf32>
    %cst_18 = arith.constant 1.280000e+02 : f32
    %27 = vector.broadcast %cst_18 : f32 to vector<8x1xf32>
    %28 = arith.divf %26, %27 : vector<8x1xf32>
    %cst_19 = arith.constant 9.99999974E-6 : f32
    %29 = vector.broadcast %cst_19 : f32 to vector<8x1xf32>
    %30 = arith.addf %28, %29 : vector<8x1xf32>
    %31 = math.rsqrt %30 : vector<8x1xf32>
    %32 = vector.broadcast %31 : vector<8x1xf32> to vector<8x128xf32>
    %33 = arith.mulf %23, %32 : vector<8x128xf32>
    %34 = vector.broadcast %16 : vector<1x128xf32> to vector<8x128xf32>
    %35 = arith.mulf %33, %34 : vector<8x128xf32>
    %36 = vector.broadcast %17 : vector<1x128xf32> to vector<8x128xf32>
    %37 = arith.addf %35, %36 : vector<8x128xf32>
    %c0_20 = arith.constant 0 : index
    %c0_21 = arith.constant 0 : index
    %38 = vector.load %arg8[%c0_20, %c0_21] : memref<8x128xf32, #tpu.memory_space<vmem>>, vector<8x128xf32>
    tpu.vector_store %arg8[%c0_20, %c0_21], %37 {strides = array<i32>} : memref<8x128xf32, #tpu.memory_space<vmem>>, vector<8x128xf32>,
    return
  }
  func.func @transform_0(%arg0: i32) -> (i32, i32) {
    %c0_i32 = arith.constant 0 : i32
    %c0_i32_0 = arith.constant 0 : i32
    return %arg0, %c0_i32 : i32, i32
  }
  func.func @transform_1(%arg0: i32) -> (i32, i32) {
    %c0_i32 = arith.constant 0 : i32
    %c0_i32_0 = arith.constant 0 : i32
    %c0_i32_1 = arith.constant 0 : i32
    return %c0_i32, %c0_i32_0 : i32, i32
  }
  func.func @transform_2(%arg0: i32) -> (i32, i32) {
    %c0_i32 = arith.constant 0 : i32
    %c0_i32_0 = arith.constant 0 : i32
    %c0_i32_1 = arith.constant 0 : i32
    return %c0_i32, %c0_i32_0 : i32, i32
  }
  func.func @transform_3(%arg0: i32) -> (i32, i32) {
    %c0_i32 = arith.constant 0 : i32
    %c0_i32_0 = arith.constant 0 : i32
    %c0_i32_1 = arith.constant 0 : i32
    return %c0_i32, %c0_i32_0 : i32, i32
  }
  func.func @transform_4(%arg0: i32) -> (i32, i32) {
    %c0_i32 = arith.constant 0 : i32
    %c0_i32_0 = arith.constant 0 : i32
    %c0_i32_1 = arith.constant 0 : i32
    return %c0_i32, %c0_i32_0 : i32, i32
  }
  func.func @transform_5(%arg0: i32) -> (i32, i32) {
    %c0_i32 = arith.constant 0 : i32
    %c0_i32_0 = arith.constant 0 : i32
    %c0_i32_1 = arith.constant 0 : i32
    return %c0_i32, %c0_i32_0 : i32, i32
  }
  func.func @transform_6(%arg0: i32) -> (i32, i32) {
    %c0_i32 = arith.constant 0 : i32
    %c0_i32_0 = arith.constant 0 : i32
    %c0_i32_1 = arith.constant 0 : i32
    return %c0_i32, %c0_i32_0 : i32, i32
  }
  func.func @transform_7(%arg0: i32) -> (i32, i32) {
    %c0_i32 = arith.constant 0 : i32
    %c0_i32_0 = arith.constant 0 : i32
    return %arg0, %c0_i32 : i32, i32
  }
}

module attributes {stable_mosaic.version = 11 : i64} {
  func.func @_mha_pe_kernel(%arg0: i32, %arg1: memref<1x8x128xf32, #tpu.memory_space<vmem>>, %arg2: memref<8x128xf32, #tpu.memory_space<vmem>>, %arg3: memref<128x384xbf16, #tpu.memory_space<vmem>>, %arg4: memref<1x384xf32, #tpu.memory_space<vmem>>, %arg5: memref<128x128xbf16, #tpu.memory_space<vmem>>, %arg6: memref<1x128xf32, #tpu.memory_space<vmem>>, %arg7: memref<1x1x8xf32, #tpu.memory_space<vmem>>, %arg8: memref<1x128xf32, #tpu.memory_space<vmem>>, %arg9: memref<1x128xf32, #tpu.memory_space<vmem>>, %arg10: memref<1x8x128xf32, #tpu.memory_space<vmem>>) attributes {dimension_semantics = [#tpu.dimension_semantics<parallel>], iteration_bounds = array<i64: 2>, scalar_prefetch = 0 : i64, scratch_operands = 0 : i64, tpu.core_type = #tpu.core_type<tc>, window_params = [{transform_indices = @transform_0, window_bounds = array<i64: 1, 8, 128>}, {pipeline_mode = #tpu.pipeline_mode<synchronous>, transform_indices = @transform_1, window_bounds = array<i64: 8, 128>}, {pipeline_mode = #tpu.pipeline_mode<synchronous>, transform_indices = @transform_2, window_bounds = array<i64: 128, 384>}, {pipeline_mode = #tpu.pipeline_mode<synchronous>, transform_indices = @transform_3, window_bounds = array<i64: 1, 384>}, {pipeline_mode = #tpu.pipeline_mode<synchronous>, transform_indices = @transform_4, window_bounds = array<i64: 128, 128>}, {pipeline_mode = #tpu.pipeline_mode<synchronous>, transform_indices = @transform_5, window_bounds = array<i64: 1, 128>}, {transform_indices = @transform_6, window_bounds = array<i64: 1, 1, 8>}, {pipeline_mode = #tpu.pipeline_mode<synchronous>, transform_indices = @transform_7, window_bounds = array<i64: 1, 128>}, {pipeline_mode = #tpu.pipeline_mode<synchronous>, transform_indices = @transform_8, window_bounds = array<i64: 1, 128>}, {transform_indices = @transform_9, window_bounds = array<i64: 1, 8, 128>}]} {
    %c0 = arith.constant 0 : index
    %c0_0 = arith.constant 0 : index
    %c0_1 = arith.constant 0 : index
    %0 = vector.load %arg1[%c0, %c0_0, %c0_1] : memref<1x8x128xf32, #tpu.memory_space<vmem>>, vector<1x8x128xf32>
    %1 = vector.shape_cast %0 : vector<1x8x128xf32> to vector<8x128xf32>
    %c0_2 = arith.constant 0 : index
    %c0_3 = arith.constant 0 : index
    %2 = vector.load %arg2[%c0_2, %c0_3] : memref<8x128xf32, #tpu.memory_space<vmem>>, vector<8x128xf32>
    %3 = arith.addf %1, %2 : vector<8x128xf32>
    %4 = arith.truncf %3 : vector<8x128xf32> to vector<8x128xbf16>
    %c0_4 = arith.constant 0 : index
    %c0_5 = arith.constant 0 : index
    %5 = vector.load %arg3[%c0_4, %c0_5] : memref<128x384xbf16, #tpu.memory_space<vmem>>, vector<128x384xbf16>
    %cst = arith.constant dense<0.000000e+00> : vector<8x384xf32>
    %6 = tpu.matmul %4, %5, %cst {dimension_numbers = #tpu.dot_dimension_numbers<[1], [0], [0], [1], [0, 0, 1, 1], [], []>} : vector<8x128xbf16>, vector<128x384xbf16>, vector<8x384xf32> -> vector<8x384xf32>
    %c0_6 = arith.constant 0 : index
    %c0_7 = arith.constant 0 : index
    %7 = vector.load %arg4[%c0_6, %c0_7] : memref<1x384xf32, #tpu.memory_space<vmem>>, vector<1x384xf32>
    %8 = vector.broadcast %7 : vector<1x384xf32> to vector<8x384xf32>
    %9 = arith.addf %6, %8 : vector<8x384xf32>
    %c0_8 = arith.constant 0 : index
    %c0_9 = arith.constant 0 : index
    %c0_10 = arith.constant 0 : index
    %10 = vector.load %arg7[%c0_8, %c0_9, %c0_10] : memref<1x1x8xf32, #tpu.memory_space<vmem>>, vector<1x1x8xf32>
    %11 = vector.shape_cast %10 : vector<1x1x8xf32> to vector<1x8xf32>
    %12 = vector.extract_strided_slice %9 {offsets = [0, 0], sizes = [8, 64], strides = [1, 1]} : vector<8x384xf32> to vector<8x64xf32>
    %cst_11 = arith.constant 1.250000e-01 : f32
    %13 = vector.broadcast %cst_11 : f32 to vector<8x64xf32>
    %14 = arith.mulf %12, %13 : vector<8x64xf32>
    %15 = arith.truncf %14 : vector<8x64xf32> to vector<8x64xbf16>
    %16 = vector.extract_strided_slice %9 {offsets = [0, 128], sizes = [8, 64], strides = [1, 1]} : vector<8x384xf32> to vector<8x64xf32>
    %17 = arith.truncf %16 : vector<8x64xf32> to vector<8x64xbf16>
    %18 = vector.extract_strided_slice %9 {offsets = [0, 256], sizes = [8, 64], strides = [1, 1]} : vector<8x384xf32> to vector<8x64xf32>
    %19 = arith.truncf %18 : vector<8x64xf32> to vector<8x64xbf16>
    %cst_12 = arith.constant dense<0.000000e+00> : vector<8x8xf32>
    %20 = tpu.matmul %15, %17, %cst_12 {dimension_numbers = #tpu.dot_dimension_numbers<[1], [1], [0], [0], [0, 0, 1, 0], [], []>} : vector<8x64xbf16>, vector<8x64xbf16>, vector<8x8xf32> -> vector<8x8xf32>
    %21 = vector.broadcast %11 : vector<1x8xf32> to vector<8x8xf32>
    %22 = arith.addf %20, %21 : vector<8x8xf32>
    %cst_13 = arith.constant dense<0xFF800000> : vector<8xf32>
    %23 = vector.multi_reduction <maximumf>, %22, %cst_13 [1] : vector<8x8xf32> to vector<8xf32>
    %24 = vector.shape_cast %23 : vector<8xf32> to vector<8x1xf32>
    %25 = vector.broadcast %24 : vector<8x1xf32> to vector<8x8xf32>
    %26 = arith.subf %22, %25 : vector<8x8xf32>
    %27 = math.exp %26 : vector<8x8xf32>
    %cst_14 = arith.constant dense<0.000000e+00> : vector<8xf32>
    %28 = vector.multi_reduction <add>, %27, %cst_14 [1] : vector<8x8xf32> to vector<8xf32>
    %29 = vector.shape_cast %28 : vector<8xf32> to vector<8x1xf32>
    %30 = tpu.reciprocal %29 {approx = true} : vector<8x1xf32> -> vector<8x1xf32>
    %31 = vector.broadcast %30 : vector<8x1xf32> to vector<8x8xf32>
    %32 = arith.mulf %27, %31 : vector<8x8xf32>
    %33 = arith.truncf %32 : vector<8x8xf32> to vector<8x8xbf16>
    %cst_15 = arith.constant dense<0.000000e+00> : vector<8x64xf32>
    %34 = tpu.matmul %33, %19, %cst_15 {dimension_numbers = #tpu.dot_dimension_numbers<[1], [0], [0], [1], [0, 0, 1, 1], [], []>} : vector<8x8xbf16>, vector<8x64xbf16>, vector<8x64xf32> -> vector<8x64xf32>
    %35 = vector.extract_strided_slice %9 {offsets = [0, 64], sizes = [8, 64], strides = [1, 1]} : vector<8x384xf32> to vector<8x64xf32>
    %cst_16 = arith.constant 1.250000e-01 : f32
    %36 = vector.broadcast %cst_16 : f32 to vector<8x64xf32>
    %37 = arith.mulf %35, %36 : vector<8x64xf32>
    %38 = arith.truncf %37 : vector<8x64xf32> to vector<8x64xbf16>
    %39 = vector.extract_strided_slice %9 {offsets = [0, 192], sizes = [8, 64], strides = [1, 1]} : vector<8x384xf32> to vector<8x64xf32>
    %40 = arith.truncf %39 : vector<8x64xf32> to vector<8x64xbf16>
    %41 = vector.extract_strided_slice %9 {offsets = [0, 320], sizes = [8, 64], strides = [1, 1]} : vector<8x384xf32> to vector<8x64xf32>
    %42 = arith.truncf %41 : vector<8x64xf32> to vector<8x64xbf16>
    %cst_17 = arith.constant dense<0.000000e+00> : vector<8x8xf32>
    %43 = tpu.matmul %38, %40, %cst_17 {dimension_numbers = #tpu.dot_dimension_numbers<[1], [1], [0], [0], [0, 0, 1, 0], [], []>} : vector<8x64xbf16>, vector<8x64xbf16>, vector<8x8xf32> -> vector<8x8xf32>
    %44 = vector.broadcast %11 : vector<1x8xf32> to vector<8x8xf32>
    %45 = arith.addf %43, %44 : vector<8x8xf32>
    %cst_18 = arith.constant dense<0xFF800000> : vector<8xf32>
    %46 = vector.multi_reduction <maximumf>, %45, %cst_18 [1] : vector<8x8xf32> to vector<8xf32>
    %47 = vector.shape_cast %46 : vector<8xf32> to vector<8x1xf32>
    %48 = vector.broadcast %47 : vector<8x1xf32> to vector<8x8xf32>
    %49 = arith.subf %45, %48 : vector<8x8xf32>
    %50 = math.exp %49 : vector<8x8xf32>
    %cst_19 = arith.constant dense<0.000000e+00> : vector<8xf32>
    %51 = vector.multi_reduction <add>, %50, %cst_19 [1] : vector<8x8xf32> to vector<8xf32>
    %52 = vector.shape_cast %51 : vector<8xf32> to vector<8x1xf32>
    %53 = tpu.reciprocal %52 {approx = true} : vector<8x1xf32> -> vector<8x1xf32>
    %54 = vector.broadcast %53 : vector<8x1xf32> to vector<8x8xf32>
    %55 = arith.mulf %50, %54 : vector<8x8xf32>
    %56 = arith.truncf %55 : vector<8x8xf32> to vector<8x8xbf16>
    %cst_20 = arith.constant dense<0.000000e+00> : vector<8x64xf32>
    %57 = tpu.matmul %56, %42, %cst_20 {dimension_numbers = #tpu.dot_dimension_numbers<[1], [0], [0], [1], [0, 0, 1, 1], [], []>} : vector<8x8xbf16>, vector<8x64xbf16>, vector<8x64xf32> -> vector<8x64xf32>
    %58 = tpu.concatenate %34, %57 in 1 : vector<8x64xf32>, vector<8x64xf32> -> vector<8x128xf32>
    %59 = arith.truncf %58 : vector<8x128xf32> to vector<8x128xbf16>
    %c0_21 = arith.constant 0 : index
    %c0_22 = arith.constant 0 : index
    %60 = vector.load %arg5[%c0_21, %c0_22] : memref<128x128xbf16, #tpu.memory_space<vmem>>, vector<128x128xbf16>
    %cst_23 = arith.constant dense<0.000000e+00> : vector<8x128xf32>
    %61 = tpu.matmul %59, %60, %cst_23 {dimension_numbers = #tpu.dot_dimension_numbers<[1], [0], [0], [1], [0, 0, 1, 1], [], []>} : vector<8x128xbf16>, vector<128x128xbf16>, vector<8x128xf32> -> vector<8x128xf32>
    %c0_24 = arith.constant 0 : index
    %c0_25 = arith.constant 0 : index
    %62 = vector.load %arg6[%c0_24, %c0_25] : memref<1x128xf32, #tpu.memory_space<vmem>>, vector<1x128xf32>
    %63 = vector.broadcast %62 : vector<1x128xf32> to vector<8x128xf32>
    %64 = arith.addf %61, %63 : vector<8x128xf32>
    %65 = arith.addf %64, %3 : vector<8x128xf32>
    %c0_26 = arith.constant 0 : index
    %c0_27 = arith.constant 0 : index
    %66 = vector.load %arg8[%c0_26, %c0_27] : memref<1x128xf32, #tpu.memory_space<vmem>>, vector<1x128xf32>
    %c0_28 = arith.constant 0 : index
    %c0_29 = arith.constant 0 : index
    %67 = vector.load %arg9[%c0_28, %c0_29] : memref<1x128xf32, #tpu.memory_space<vmem>>, vector<1x128xf32>
    %cst_30 = arith.constant dense<0.000000e+00> : vector<8xf32>
    %68 = vector.multi_reduction <add>, %65, %cst_30 [1] : vector<8x128xf32> to vector<8xf32>
    %69 = vector.shape_cast %68 : vector<8xf32> to vector<8x1xf32>
    %cst_31 = arith.constant 1.280000e+02 : f32
    %70 = vector.broadcast %cst_31 : f32 to vector<8x1xf32>
    %71 = arith.divf %69, %70 : vector<8x1xf32>
    %72 = vector.broadcast %71 : vector<8x1xf32> to vector<8x128xf32>
    %73 = arith.subf %65, %72 : vector<8x128xf32>
    %74 = arith.mulf %73, %73 : vector<8x128xf32>
    %cst_32 = arith.constant dense<0.000000e+00> : vector<8xf32>
    %75 = vector.multi_reduction <add>, %74, %cst_32 [1] : vector<8x128xf32> to vector<8xf32>
    %76 = vector.shape_cast %75 : vector<8xf32> to vector<8x1xf32>
    %cst_33 = arith.constant 1.280000e+02 : f32
    %77 = vector.broadcast %cst_33 : f32 to vector<8x1xf32>
    %78 = arith.divf %76, %77 : vector<8x1xf32>
    %cst_34 = arith.constant 9.99999974E-6 : f32
    %79 = vector.broadcast %cst_34 : f32 to vector<8x1xf32>
    %80 = arith.addf %78, %79 : vector<8x1xf32>
    %81 = math.rsqrt %80 : vector<8x1xf32>
    %82 = vector.broadcast %81 : vector<8x1xf32> to vector<8x128xf32>
    %83 = arith.mulf %73, %82 : vector<8x128xf32>
    %84 = vector.broadcast %66 : vector<1x128xf32> to vector<8x128xf32>
    %85 = arith.mulf %83, %84 : vector<8x128xf32>
    %86 = vector.broadcast %67 : vector<1x128xf32> to vector<8x128xf32>
    %87 = arith.addf %85, %86 : vector<8x128xf32>
    %c0_35 = arith.constant 0 : index
    %c0_36 = arith.constant 0 : index
    %c0_37 = arith.constant 0 : index
    %88 = vector.load %arg10[%c0_35, %c0_36, %c0_37] : memref<1x8x128xf32, #tpu.memory_space<vmem>>, vector<1x8x128xf32>
    %89 = vector.shape_cast %88 : vector<1x8x128xf32> to vector<8x128xf32>
    %90 = vector.shape_cast %87 : vector<8x128xf32> to vector<1x8x128xf32>
    tpu.vector_store %arg10[%c0_35, %c0_36, %c0_37], %90 {strides = array<i32>} : memref<1x8x128xf32, #tpu.memory_space<vmem>>, vector<1x8x128xf32>,
    return
  }
  func.func @transform_0(%arg0: i32) -> (i32, i32, i32) {
    %c0_i32 = arith.constant 0 : i32
    %c0_i32_0 = arith.constant 0 : i32
    %c0_i32_1 = arith.constant 0 : i32
    return %arg0, %c0_i32, %c0_i32_0 : i32, i32, i32
  }
  func.func @transform_1(%arg0: i32) -> (i32, i32) {
    %c0_i32 = arith.constant 0 : i32
    %c0_i32_0 = arith.constant 0 : i32
    %c0_i32_1 = arith.constant 0 : i32
    return %c0_i32, %c0_i32_0 : i32, i32
  }
  func.func @transform_2(%arg0: i32) -> (i32, i32) {
    %c0_i32 = arith.constant 0 : i32
    %c0_i32_0 = arith.constant 0 : i32
    %c0_i32_1 = arith.constant 0 : i32
    return %c0_i32, %c0_i32_0 : i32, i32
  }
  func.func @transform_3(%arg0: i32) -> (i32, i32) {
    %c0_i32 = arith.constant 0 : i32
    %c0_i32_0 = arith.constant 0 : i32
    %c0_i32_1 = arith.constant 0 : i32
    return %c0_i32, %c0_i32_0 : i32, i32
  }
  func.func @transform_4(%arg0: i32) -> (i32, i32) {
    %c0_i32 = arith.constant 0 : i32
    %c0_i32_0 = arith.constant 0 : i32
    %c0_i32_1 = arith.constant 0 : i32
    return %c0_i32, %c0_i32_0 : i32, i32
  }
  func.func @transform_5(%arg0: i32) -> (i32, i32) {
    %c0_i32 = arith.constant 0 : i32
    %c0_i32_0 = arith.constant 0 : i32
    %c0_i32_1 = arith.constant 0 : i32
    return %c0_i32, %c0_i32_0 : i32, i32
  }
  func.func @transform_6(%arg0: i32) -> (i32, i32, i32) {
    %c0_i32 = arith.constant 0 : i32
    %c0_i32_0 = arith.constant 0 : i32
    %c0_i32_1 = arith.constant 0 : i32
    return %arg0, %c0_i32, %c0_i32_0 : i32, i32, i32
  }
  func.func @transform_7(%arg0: i32) -> (i32, i32) {
    %c0_i32 = arith.constant 0 : i32
    %c0_i32_0 = arith.constant 0 : i32
    %c0_i32_1 = arith.constant 0 : i32
    return %c0_i32, %c0_i32_0 : i32, i32
  }
  func.func @transform_8(%arg0: i32) -> (i32, i32) {
    %c0_i32 = arith.constant 0 : i32
    %c0_i32_0 = arith.constant 0 : i32
    %c0_i32_1 = arith.constant 0 : i32
    return %c0_i32, %c0_i32_0 : i32, i32
  }
  func.func @transform_9(%arg0: i32) -> (i32, i32, i32) {
    %c0_i32 = arith.constant 0 : i32
    %c0_i32_0 = arith.constant 0 : i32
    %c0_i32_1 = arith.constant 0 : i32
    return %arg0, %c0_i32, %c0_i32_0 : i32, i32, i32
  }
}

module attributes {stable_mosaic.version = 11 : i64} {
  func.func @_mha_kernel(%arg0: i32, %arg1: memref<1x8x128xf32, #tpu.memory_space<vmem>>, %arg2: memref<128x384xbf16, #tpu.memory_space<vmem>>, %arg3: memref<1x384xf32, #tpu.memory_space<vmem>>, %arg4: memref<128x128xbf16, #tpu.memory_space<vmem>>, %arg5: memref<1x128xf32, #tpu.memory_space<vmem>>, %arg6: memref<1x1x8xf32, #tpu.memory_space<vmem>>, %arg7: memref<1x128xf32, #tpu.memory_space<vmem>>, %arg8: memref<1x128xf32, #tpu.memory_space<vmem>>, %arg9: memref<1x8x128xf32, #tpu.memory_space<vmem>>) attributes {dimension_semantics = [#tpu.dimension_semantics<parallel>], iteration_bounds = array<i64: 2>, scalar_prefetch = 0 : i64, scratch_operands = 0 : i64, tpu.core_type = #tpu.core_type<tc>, window_params = [{transform_indices = @transform_0, window_bounds = array<i64: 1, 8, 128>}, {pipeline_mode = #tpu.pipeline_mode<synchronous>, transform_indices = @transform_1, window_bounds = array<i64: 128, 384>}, {pipeline_mode = #tpu.pipeline_mode<synchronous>, transform_indices = @transform_2, window_bounds = array<i64: 1, 384>}, {pipeline_mode = #tpu.pipeline_mode<synchronous>, transform_indices = @transform_3, window_bounds = array<i64: 128, 128>}, {pipeline_mode = #tpu.pipeline_mode<synchronous>, transform_indices = @transform_4, window_bounds = array<i64: 1, 128>}, {transform_indices = @transform_5, window_bounds = array<i64: 1, 1, 8>}, {pipeline_mode = #tpu.pipeline_mode<synchronous>, transform_indices = @transform_6, window_bounds = array<i64: 1, 128>}, {pipeline_mode = #tpu.pipeline_mode<synchronous>, transform_indices = @transform_7, window_bounds = array<i64: 1, 128>}, {transform_indices = @transform_8, window_bounds = array<i64: 1, 8, 128>}]} {
    %c0 = arith.constant 0 : index
    %c0_0 = arith.constant 0 : index
    %c0_1 = arith.constant 0 : index
    %0 = vector.load %arg1[%c0, %c0_0, %c0_1] : memref<1x8x128xf32, #tpu.memory_space<vmem>>, vector<1x8x128xf32>
    %1 = vector.shape_cast %0 : vector<1x8x128xf32> to vector<8x128xf32>
    %2 = arith.truncf %1 : vector<8x128xf32> to vector<8x128xbf16>
    %c0_2 = arith.constant 0 : index
    %c0_3 = arith.constant 0 : index
    %3 = vector.load %arg2[%c0_2, %c0_3] : memref<128x384xbf16, #tpu.memory_space<vmem>>, vector<128x384xbf16>
    %cst = arith.constant dense<0.000000e+00> : vector<8x384xf32>
    %4 = tpu.matmul %2, %3, %cst {dimension_numbers = #tpu.dot_dimension_numbers<[1], [0], [0], [1], [0, 0, 1, 1], [], []>} : vector<8x128xbf16>, vector<128x384xbf16>, vector<8x384xf32> -> vector<8x384xf32>
    %c0_4 = arith.constant 0 : index
    %c0_5 = arith.constant 0 : index
    %5 = vector.load %arg3[%c0_4, %c0_5] : memref<1x384xf32, #tpu.memory_space<vmem>>, vector<1x384xf32>
    %6 = vector.broadcast %5 : vector<1x384xf32> to vector<8x384xf32>
    %7 = arith.addf %4, %6 : vector<8x384xf32>
    %c0_6 = arith.constant 0 : index
    %c0_7 = arith.constant 0 : index
    %c0_8 = arith.constant 0 : index
    %8 = vector.load %arg6[%c0_6, %c0_7, %c0_8] : memref<1x1x8xf32, #tpu.memory_space<vmem>>, vector<1x1x8xf32>
    %9 = vector.shape_cast %8 : vector<1x1x8xf32> to vector<1x8xf32>
    %10 = vector.extract_strided_slice %7 {offsets = [0, 0], sizes = [8, 64], strides = [1, 1]} : vector<8x384xf32> to vector<8x64xf32>
    %cst_9 = arith.constant 1.250000e-01 : f32
    %11 = vector.broadcast %cst_9 : f32 to vector<8x64xf32>
    %12 = arith.mulf %10, %11 : vector<8x64xf32>
    %13 = arith.truncf %12 : vector<8x64xf32> to vector<8x64xbf16>
    %14 = vector.extract_strided_slice %7 {offsets = [0, 128], sizes = [8, 64], strides = [1, 1]} : vector<8x384xf32> to vector<8x64xf32>
    %15 = arith.truncf %14 : vector<8x64xf32> to vector<8x64xbf16>
    %16 = vector.extract_strided_slice %7 {offsets = [0, 256], sizes = [8, 64], strides = [1, 1]} : vector<8x384xf32> to vector<8x64xf32>
    %17 = arith.truncf %16 : vector<8x64xf32> to vector<8x64xbf16>
    %cst_10 = arith.constant dense<0.000000e+00> : vector<8x8xf32>
    %18 = tpu.matmul %13, %15, %cst_10 {dimension_numbers = #tpu.dot_dimension_numbers<[1], [1], [0], [0], [0, 0, 1, 0], [], []>} : vector<8x64xbf16>, vector<8x64xbf16>, vector<8x8xf32> -> vector<8x8xf32>
    %19 = vector.broadcast %9 : vector<1x8xf32> to vector<8x8xf32>
    %20 = arith.addf %18, %19 : vector<8x8xf32>
    %cst_11 = arith.constant dense<0xFF800000> : vector<8xf32>
    %21 = vector.multi_reduction <maximumf>, %20, %cst_11 [1] : vector<8x8xf32> to vector<8xf32>
    %22 = vector.shape_cast %21 : vector<8xf32> to vector<8x1xf32>
    %23 = vector.broadcast %22 : vector<8x1xf32> to vector<8x8xf32>
    %24 = arith.subf %20, %23 : vector<8x8xf32>
    %25 = math.exp %24 : vector<8x8xf32>
    %cst_12 = arith.constant dense<0.000000e+00> : vector<8xf32>
    %26 = vector.multi_reduction <add>, %25, %cst_12 [1] : vector<8x8xf32> to vector<8xf32>
    %27 = vector.shape_cast %26 : vector<8xf32> to vector<8x1xf32>
    %28 = tpu.reciprocal %27 {approx = true} : vector<8x1xf32> -> vector<8x1xf32>
    %29 = vector.broadcast %28 : vector<8x1xf32> to vector<8x8xf32>
    %30 = arith.mulf %25, %29 : vector<8x8xf32>
    %31 = arith.truncf %30 : vector<8x8xf32> to vector<8x8xbf16>
    %cst_13 = arith.constant dense<0.000000e+00> : vector<8x64xf32>
    %32 = tpu.matmul %31, %17, %cst_13 {dimension_numbers = #tpu.dot_dimension_numbers<[1], [0], [0], [1], [0, 0, 1, 1], [], []>} : vector<8x8xbf16>, vector<8x64xbf16>, vector<8x64xf32> -> vector<8x64xf32>
    %33 = vector.extract_strided_slice %7 {offsets = [0, 64], sizes = [8, 64], strides = [1, 1]} : vector<8x384xf32> to vector<8x64xf32>
    %cst_14 = arith.constant 1.250000e-01 : f32
    %34 = vector.broadcast %cst_14 : f32 to vector<8x64xf32>
    %35 = arith.mulf %33, %34 : vector<8x64xf32>
    %36 = arith.truncf %35 : vector<8x64xf32> to vector<8x64xbf16>
    %37 = vector.extract_strided_slice %7 {offsets = [0, 192], sizes = [8, 64], strides = [1, 1]} : vector<8x384xf32> to vector<8x64xf32>
    %38 = arith.truncf %37 : vector<8x64xf32> to vector<8x64xbf16>
    %39 = vector.extract_strided_slice %7 {offsets = [0, 320], sizes = [8, 64], strides = [1, 1]} : vector<8x384xf32> to vector<8x64xf32>
    %40 = arith.truncf %39 : vector<8x64xf32> to vector<8x64xbf16>
    %cst_15 = arith.constant dense<0.000000e+00> : vector<8x8xf32>
    %41 = tpu.matmul %36, %38, %cst_15 {dimension_numbers = #tpu.dot_dimension_numbers<[1], [1], [0], [0], [0, 0, 1, 0], [], []>} : vector<8x64xbf16>, vector<8x64xbf16>, vector<8x8xf32> -> vector<8x8xf32>
    %42 = vector.broadcast %9 : vector<1x8xf32> to vector<8x8xf32>
    %43 = arith.addf %41, %42 : vector<8x8xf32>
    %cst_16 = arith.constant dense<0xFF800000> : vector<8xf32>
    %44 = vector.multi_reduction <maximumf>, %43, %cst_16 [1] : vector<8x8xf32> to vector<8xf32>
    %45 = vector.shape_cast %44 : vector<8xf32> to vector<8x1xf32>
    %46 = vector.broadcast %45 : vector<8x1xf32> to vector<8x8xf32>
    %47 = arith.subf %43, %46 : vector<8x8xf32>
    %48 = math.exp %47 : vector<8x8xf32>
    %cst_17 = arith.constant dense<0.000000e+00> : vector<8xf32>
    %49 = vector.multi_reduction <add>, %48, %cst_17 [1] : vector<8x8xf32> to vector<8xf32>
    %50 = vector.shape_cast %49 : vector<8xf32> to vector<8x1xf32>
    %51 = tpu.reciprocal %50 {approx = true} : vector<8x1xf32> -> vector<8x1xf32>
    %52 = vector.broadcast %51 : vector<8x1xf32> to vector<8x8xf32>
    %53 = arith.mulf %48, %52 : vector<8x8xf32>
    %54 = arith.truncf %53 : vector<8x8xf32> to vector<8x8xbf16>
    %cst_18 = arith.constant dense<0.000000e+00> : vector<8x64xf32>
    %55 = tpu.matmul %54, %40, %cst_18 {dimension_numbers = #tpu.dot_dimension_numbers<[1], [0], [0], [1], [0, 0, 1, 1], [], []>} : vector<8x8xbf16>, vector<8x64xbf16>, vector<8x64xf32> -> vector<8x64xf32>
    %56 = tpu.concatenate %32, %55 in 1 : vector<8x64xf32>, vector<8x64xf32> -> vector<8x128xf32>
    %57 = arith.truncf %56 : vector<8x128xf32> to vector<8x128xbf16>
    %c0_19 = arith.constant 0 : index
    %c0_20 = arith.constant 0 : index
    %58 = vector.load %arg4[%c0_19, %c0_20] : memref<128x128xbf16, #tpu.memory_space<vmem>>, vector<128x128xbf16>
    %cst_21 = arith.constant dense<0.000000e+00> : vector<8x128xf32>
    %59 = tpu.matmul %57, %58, %cst_21 {dimension_numbers = #tpu.dot_dimension_numbers<[1], [0], [0], [1], [0, 0, 1, 1], [], []>} : vector<8x128xbf16>, vector<128x128xbf16>, vector<8x128xf32> -> vector<8x128xf32>
    %c0_22 = arith.constant 0 : index
    %c0_23 = arith.constant 0 : index
    %60 = vector.load %arg5[%c0_22, %c0_23] : memref<1x128xf32, #tpu.memory_space<vmem>>, vector<1x128xf32>
    %61 = vector.broadcast %60 : vector<1x128xf32> to vector<8x128xf32>
    %62 = arith.addf %59, %61 : vector<8x128xf32>
    %63 = arith.addf %62, %1 : vector<8x128xf32>
    %c0_24 = arith.constant 0 : index
    %c0_25 = arith.constant 0 : index
    %64 = vector.load %arg7[%c0_24, %c0_25] : memref<1x128xf32, #tpu.memory_space<vmem>>, vector<1x128xf32>
    %c0_26 = arith.constant 0 : index
    %c0_27 = arith.constant 0 : index
    %65 = vector.load %arg8[%c0_26, %c0_27] : memref<1x128xf32, #tpu.memory_space<vmem>>, vector<1x128xf32>
    %cst_28 = arith.constant dense<0.000000e+00> : vector<8xf32>
    %66 = vector.multi_reduction <add>, %63, %cst_28 [1] : vector<8x128xf32> to vector<8xf32>
    %67 = vector.shape_cast %66 : vector<8xf32> to vector<8x1xf32>
    %cst_29 = arith.constant 1.280000e+02 : f32
    %68 = vector.broadcast %cst_29 : f32 to vector<8x1xf32>
    %69 = arith.divf %67, %68 : vector<8x1xf32>
    %70 = vector.broadcast %69 : vector<8x1xf32> to vector<8x128xf32>
    %71 = arith.subf %63, %70 : vector<8x128xf32>
    %72 = arith.mulf %71, %71 : vector<8x128xf32>
    %cst_30 = arith.constant dense<0.000000e+00> : vector<8xf32>
    %73 = vector.multi_reduction <add>, %72, %cst_30 [1] : vector<8x128xf32> to vector<8xf32>
    %74 = vector.shape_cast %73 : vector<8xf32> to vector<8x1xf32>
    %cst_31 = arith.constant 1.280000e+02 : f32
    %75 = vector.broadcast %cst_31 : f32 to vector<8x1xf32>
    %76 = arith.divf %74, %75 : vector<8x1xf32>
    %cst_32 = arith.constant 9.99999974E-6 : f32
    %77 = vector.broadcast %cst_32 : f32 to vector<8x1xf32>
    %78 = arith.addf %76, %77 : vector<8x1xf32>
    %79 = math.rsqrt %78 : vector<8x1xf32>
    %80 = vector.broadcast %79 : vector<8x1xf32> to vector<8x128xf32>
    %81 = arith.mulf %71, %80 : vector<8x128xf32>
    %82 = vector.broadcast %64 : vector<1x128xf32> to vector<8x128xf32>
    %83 = arith.mulf %81, %82 : vector<8x128xf32>
    %84 = vector.broadcast %65 : vector<1x128xf32> to vector<8x128xf32>
    %85 = arith.addf %83, %84 : vector<8x128xf32>
    %c0_33 = arith.constant 0 : index
    %c0_34 = arith.constant 0 : index
    %c0_35 = arith.constant 0 : index
    %86 = vector.load %arg9[%c0_33, %c0_34, %c0_35] : memref<1x8x128xf32, #tpu.memory_space<vmem>>, vector<1x8x128xf32>
    %87 = vector.shape_cast %86 : vector<1x8x128xf32> to vector<8x128xf32>
    %88 = vector.shape_cast %85 : vector<8x128xf32> to vector<1x8x128xf32>
    tpu.vector_store %arg9[%c0_33, %c0_34, %c0_35], %88 {strides = array<i32>} : memref<1x8x128xf32, #tpu.memory_space<vmem>>, vector<1x8x128xf32>,
    return
  }
  func.func @transform_0(%arg0: i32) -> (i32, i32, i32) {
    %c0_i32 = arith.constant 0 : i32
    %c0_i32_0 = arith.constant 0 : i32
    %c0_i32_1 = arith.constant 0 : i32
    return %arg0, %c0_i32, %c0_i32_0 : i32, i32, i32
  }
  func.func @transform_1(%arg0: i32) -> (i32, i32) {
    %c0_i32 = arith.constant 0 : i32
    %c0_i32_0 = arith.constant 0 : i32
    %c0_i32_1 = arith.constant 0 : i32
    return %c0_i32, %c0_i32_0 : i32, i32
  }
  func.func @transform_2(%arg0: i32) -> (i32, i32) {
    %c0_i32 = arith.constant 0 : i32
    %c0_i32_0 = arith.constant 0 : i32
    %c0_i32_1 = arith.constant 0 : i32
    return %c0_i32, %c0_i32_0 : i32, i32
  }
  func.func @transform_3(%arg0: i32) -> (i32, i32) {
    %c0_i32 = arith.constant 0 : i32
    %c0_i32_0 = arith.constant 0 : i32
    %c0_i32_1 = arith.constant 0 : i32
    return %c0_i32, %c0_i32_0 : i32, i32
  }
  func.func @transform_4(%arg0: i32) -> (i32, i32) {
    %c0_i32 = arith.constant 0 : i32
    %c0_i32_0 = arith.constant 0 : i32
    %c0_i32_1 = arith.constant 0 : i32
    return %c0_i32, %c0_i32_0 : i32, i32
  }
  func.func @transform_5(%arg0: i32) -> (i32, i32, i32) {
    %c0_i32 = arith.constant 0 : i32
    %c0_i32_0 = arith.constant 0 : i32
    %c0_i32_1 = arith.constant 0 : i32
    return %arg0, %c0_i32, %c0_i32_0 : i32, i32, i32
  }
  func.func @transform_6(%arg0: i32) -> (i32, i32) {
    %c0_i32 = arith.constant 0 : i32
    %c0_i32_0 = arith.constant 0 : i32
    %c0_i32_1 = arith.constant 0 : i32
    return %c0_i32, %c0_i32_0 : i32, i32
  }
  func.func @transform_7(%arg0: i32) -> (i32, i32) {
    %c0_i32 = arith.constant 0 : i32
    %c0_i32_0 = arith.constant 0 : i32
    %c0_i32_1 = arith.constant 0 : i32
    return %c0_i32, %c0_i32_0 : i32, i32
  }
  func.func @transform_8(%arg0: i32) -> (i32, i32, i32) {
    %c0_i32 = arith.constant 0 : i32
    %c0_i32_0 = arith.constant 0 : i32
    %c0_i32_1 = arith.constant 0 : i32
    return %arg0, %c0_i32, %c0_i32_0 : i32, i32, i32
  }
}

module attributes {stable_mosaic.version = 11 : i64} {
  func.func @_ln_kernel(%arg0: i32, %arg1: memref<8x128xf32, #tpu.memory_space<vmem>>, %arg2: memref<1x128xf32, #tpu.memory_space<vmem>>, %arg3: memref<1x128xf32, #tpu.memory_space<vmem>>, %arg4: memref<8x128xf32, #tpu.memory_space<vmem>>) attributes {dimension_semantics = [#tpu.dimension_semantics<parallel>], iteration_bounds = array<i64: 2>, scalar_prefetch = 0 : i64, scratch_operands = 0 : i64, tpu.core_type = #tpu.core_type<tc>, window_params = [{transform_indices = @transform_0, window_bounds = array<i64: 8, 128>}, {pipeline_mode = #tpu.pipeline_mode<synchronous>, transform_indices = @transform_1, window_bounds = array<i64: 1, 128>}, {pipeline_mode = #tpu.pipeline_mode<synchronous>, transform_indices = @transform_2, window_bounds = array<i64: 1, 128>}, {transform_indices = @transform_3, window_bounds = array<i64: 8, 128>}]} {
    %c0 = arith.constant 0 : index
    %c0_0 = arith.constant 0 : index
    %0 = vector.load %arg1[%c0, %c0_0] : memref<8x128xf32, #tpu.memory_space<vmem>>, vector<8x128xf32>
    %c0_1 = arith.constant 0 : index
    %c0_2 = arith.constant 0 : index
    %1 = vector.load %arg2[%c0_1, %c0_2] : memref<1x128xf32, #tpu.memory_space<vmem>>, vector<1x128xf32>
    %c0_3 = arith.constant 0 : index
    %c0_4 = arith.constant 0 : index
    %2 = vector.load %arg3[%c0_3, %c0_4] : memref<1x128xf32, #tpu.memory_space<vmem>>, vector<1x128xf32>
    %cst = arith.constant dense<0.000000e+00> : vector<8xf32>
    %3 = vector.multi_reduction <add>, %0, %cst [1] : vector<8x128xf32> to vector<8xf32>
    %4 = vector.shape_cast %3 : vector<8xf32> to vector<8x1xf32>
    %cst_5 = arith.constant 1.280000e+02 : f32
    %5 = vector.broadcast %cst_5 : f32 to vector<8x1xf32>
    %6 = arith.divf %4, %5 : vector<8x1xf32>
    %7 = vector.broadcast %6 : vector<8x1xf32> to vector<8x128xf32>
    %8 = arith.subf %0, %7 : vector<8x128xf32>
    %9 = arith.mulf %8, %8 : vector<8x128xf32>
    %cst_6 = arith.constant dense<0.000000e+00> : vector<8xf32>
    %10 = vector.multi_reduction <add>, %9, %cst_6 [1] : vector<8x128xf32> to vector<8xf32>
    %11 = vector.shape_cast %10 : vector<8xf32> to vector<8x1xf32>
    %cst_7 = arith.constant 1.280000e+02 : f32
    %12 = vector.broadcast %cst_7 : f32 to vector<8x1xf32>
    %13 = arith.divf %11, %12 : vector<8x1xf32>
    %cst_8 = arith.constant 9.99999997E-7 : f32
    %14 = vector.broadcast %cst_8 : f32 to vector<8x1xf32>
    %15 = arith.addf %13, %14 : vector<8x1xf32>
    %16 = math.rsqrt %15 : vector<8x1xf32>
    %17 = vector.broadcast %16 : vector<8x1xf32> to vector<8x128xf32>
    %18 = arith.mulf %8, %17 : vector<8x128xf32>
    %19 = vector.broadcast %1 : vector<1x128xf32> to vector<8x128xf32>
    %20 = arith.mulf %18, %19 : vector<8x128xf32>
    %21 = vector.broadcast %2 : vector<1x128xf32> to vector<8x128xf32>
    %22 = arith.addf %20, %21 : vector<8x128xf32>
    %c0_9 = arith.constant 0 : index
    %c0_10 = arith.constant 0 : index
    %23 = vector.load %arg4[%c0_9, %c0_10] : memref<8x128xf32, #tpu.memory_space<vmem>>, vector<8x128xf32>
    tpu.vector_store %arg4[%c0_9, %c0_10], %22 {strides = array<i32>} : memref<8x128xf32, #tpu.memory_space<vmem>>, vector<8x128xf32>,
    return
  }
  func.func @transform_0(%arg0: i32) -> (i32, i32) {
    %c0_i32 = arith.constant 0 : i32
    %c0_i32_0 = arith.constant 0 : i32
    return %arg0, %c0_i32 : i32, i32
  }
  func.func @transform_1(%arg0: i32) -> (i32, i32) {
    %c0_i32 = arith.constant 0 : i32
    %c0_i32_0 = arith.constant 0 : i32
    %c0_i32_1 = arith.constant 0 : i32
    return %c0_i32, %c0_i32_0 : i32, i32
  }
  func.func @transform_2(%arg0: i32) -> (i32, i32) {
    %c0_i32 = arith.constant 0 : i32
    %c0_i32_0 = arith.constant 0 : i32
    %c0_i32_1 = arith.constant 0 : i32
    return %c0_i32, %c0_i32_0 : i32, i32
  }
  func.func @transform_3(%arg0: i32) -> (i32, i32) {
    %c0_i32 = arith.constant 0 : i32
    %c0_i32_0 = arith.constant 0 : i32
    return %arg0, %c0_i32 : i32, i32
  }
}

</mosaic_0001>

<bundles_post_ra>
// kernel: encode_transformer_forward.9
= control target key start
LH: loop header
LB: loop body
LE: loop exit
PB: predicated region body
PF: predicated region fallthrough
CT: control target
= control target key end

     0   :  { %8 = vsyncpa [#allocation3], 0  ;;  %s512_s0 = inlined_call_operand.vmem [shape: f32[16,128], index: 0, kind: input, shape index: {}]   ;;  %s513_s1 = inlined_call_operand.vmem [shape: f32[1,128], index: 1, kind: input, shape index: {}]   ;;  %s514_s2 = inlined_call_operand.vmem [shape: f32[1,128], index: 2, kind: input, shape index: {}]   ;;  %s515_s3 = inlined_call_operand.hbm [shape: f32[16,128], index: 3, kind: output, shape index: {}]  }
   0x1   :  { %10 = vsyncpa [#allocation3 + $0x1], 0  ;;  %s421_s12 = smov 0   ;;  %s423_s13 = smov 0  }
   0x2   :  { %s425_s14 = smov 0   ;;  %s427_s15 = smov 0  }
   0x3 LB: > { %s442_s16 = sadd.s32 4294967295, %s398_s15   ;;  %s280_s17 = sadd.s32 4294967294, %s398_s15   ;;  %s398_s15 = sphi %s427_s15, %s521_s15   ;;  %s394_s14 = sphi %s425_s14, %s520_s14   ;;  %s390_s13 = sphi %s423_s13, %s519_s13   ;;  %s386_s12 = sphi %s421_s12, %s518_s12  }
   0x4   : > { %s446_s18 = sadd.s32 1, %s398_s15   ;;  %s91_s19 = sadd.s32 1, %s394_s14 }
   0x5   : > { %s88_s20 = ssub.s32 %s398_s15, %s446_s18  ;;  %p101_p0 = scmp.ne.s32.totalorder %s394_s14, %s390_s13 }
   0x6   : > { %p89_p1 = scmp.eq.s32.totalorder %s88_s20, 0  ;;  %p102_p2 = scmp.eq.s32.totalorder %s442_s16, 1 }
   0x7   : > { %p107_p3 = scmp.ne.s32.totalorder %s390_s13, %s386_s12  ;;  %p108_p4 = scmp.eq.s32.totalorder %s280_s17, 1 }
   0x8   : > { %s457_s21 = scalar_select %p89_p1, %s394_s14, %s91_s19  }
   0x9   : > { %p459_p5 = por %p102_p2, %p101_p0  ;;  %p463_p6 = por %p108_p4, %p107_p3 }
   0xa   : > { %p283_p7 = scmp.ge.s32.totalorder %s398_s15, 1  ;;  %p139_p8 = scmp.lt.s32.totalorder %s398_s15, 3 }
   0xc   : > { %p140_p9 = pnand %p283_p7, %p139_p8 }
   0xd   : > { %p162_p10 = scmp.lt.s32.totalorder (!%p140_p9), %s442_s16, 1  ;;  %s159_s29 = sand.u32 (!%p140_p9), 1, %s390_s13  }
   0xe   : > { %143 = sbr.rel (%p140_p9) target bundleno = 293 (0x125), region = 32  ;;  %s284_s30 = sshll.u32 (!%p140_p9), %s159_s29, 3 }
   0xf   : > { %s287_s4 = sshll.u32 (!%p140_p9), %s442_s16, 3  ;;  %s161_s17 = scalar_lea.vmem (!%p140_p9), [#allocation2], %s284_s30 }
  0x10   : > { %s216_s9 = scalar_lea.hbm (!%p140_p9), %s515_s3, %s287_s4  ;;  %s206_s20 = scalar_lea.sflag (!%p140_p9), [#allocation3], %s159_s29 }
  0x11   : > { %s220_s19 = sshll.u32 (!%p140_p9), %s216_s9, 4  ;;  %s221_s19 = int_to_ptr.hbm [resolvable:$true] %s220_s19 }
  0x13   : > { %s163_s24 = scalar_select %p162_p10, %s442_s16, 1  ;;  %v400_v1 = vmov 128.0   ;;  %v330_v21 = vld [vmem:[%s513_s1] ss:$0 sm:$0xff] }
  0x14   : > { %332 = vrcp.f32 %v400_v1  ;;  %v331_v24 = vld [vmem:[%s514_s2] ss:$0 sm:$0xff]  ;;  %s218_s16 = sshll.u32 %s161_s17, 4  ;;  %s219_s16 = int_to_ptr.vmem [resolvable:$true] %s218_s16 }
  0x15   : > { %s285_s25 = sshll.u32 %s163_s24, 3  ;;  %s350_s24 = sshra.s32 %s221_s19, 4  ;;  %s351_s24 = int_to_ptr.hbm [resolvable:$true] %s350_s24 }
  0x16   : > { %s165_s28 = scalar_lea.vmem %s512_s0, %s285_s25  ;;  %s352_s25 = scalar_lea.hbm %s351_s24, 8 }
  0x17   : > { %v166_v0 = vld [vmem:[%s165_s28] sm:$0xff]  ;;  %p353_p11 = scmp.ne.s32.totalorder %s351_s24, %s352_s25  ;;  %s356_s28 = scalar_lea.hbm %s515_s3, 16 }
  0x18   : > { %169 = vadd.xlane.f32.xlu0 %v166_v0  ;;  %p357_p0 = scmp.lt.s32.totalorder %s351_s24, %s515_s3  ;;  %p358_p1 = scmp.lt.s32.totalorder %s356_s28, %s352_s25 }
  0x19   : > { %p354_p12 = pnand %p353_p11, %p459_p5 }
  0x1a   : > { %v333_v2 = vpop.eup %332  ;;  %p359_p2 = por %p358_p1, %p357_p0 }
  0x1b   : > { %v172_v3 = vmul.f32 128.0, %v333_v2  ;;  %vm176_vm0 = vweird.f32 %v333_v2  ;;  %p355_p13 = pneg %p354_p12 }
  0x1d   : > { %v173_v4 = vsub.f32 1.0, %v172_v3  ;;  %p360_p3 = pnand %p359_p2, %p355_p13 }
  0x1f   : > { %v174_v5 = vmul.f32 %v333_v2, %v173_v4 }
  0x21   : > { %v175_v6 = vadd.f32 %v333_v2, %v174_v5 }
  0x23   : > { %v177_v7 = vsel %vm176_vm0, %v333_v2, %v175_v6 }
  0x8b   : > { %v170_v8 = vpop.xlane.xlu0 %169 }
  0x8c   : > { %v178_v9 = vmul.f32 %v177_v7, %v170_v8 }
  0x8e   : > { %v179_v10 = vsub.f32 %v166_v0, %v178_v9 }
  0x90   : > { %v180_v11 = vmul.f32 %v179_v10, %v179_v10 }
  0x92   : > { %181 = vadd.xlane.f32.xlu0 %v180_v11 }
 0x105   : > { %v182_v12 = vpop.xlane.xlu0 %181 }
 0x106   : > { %v183_v13 = vmul.f32 %v182_v12, %v177_v7 }
 0x108   : > { %v184_v14 = vadd.f32 1e-06, %v183_v13 }
 0x10a   : > { %334 = vrsqrt.f32 %v184_v14  ;;  %vm191_vm2 = vweird.f32 %v184_v14 }
 0x110   : > { %v335_v15 = vpop.eup %334 }
 0x111   : > { %v186_v16 = vmul.f32 %v335_v15, %v184_v14  ;;  %vm192_vm1 = vweird.f32 %v335_v15 }
 0x112   : > { %vm193_vm3 = vmor %vm191_vm2, %vm192_vm1 }
 0x113   : > { %v187_v17 = vmul.f32 %v335_v15, %v186_v16 }
 0x115   : > { %v188_v18 = vmul.f32 0.5, %v187_v17 }
 0x117   : > { %v189_v19 = vsub.f32 1.5, %v188_v18 }
 0x119   : > { %v190_v20 = vmul.f32 %v335_v15, %v189_v19 }
 0x11b   : > { %v194_v22 = vsel %vm193_vm3, %v335_v15, %v190_v20 }
 0x11c   : > { %v195_v23 = vmul.f32 %v194_v22, %v179_v10 }
 0x11e   : > { %v199_v25 = vmul.f32 %v330_v21, %v195_v23 }
 0x120   : > { %v203_v26 = vadd.f32 %v331_v24, %v199_v25 }
 0x122   : > { %204 = vst [vmem:[%s161_s17] sm:$0xff] %v203_v26 }
 0x123   : > { %363 = shalt.err (!%p360_p3)
}
 0x124   : > { %290 = dma.vmem_to_hbm [thread:$0]  (%p459_p5), %s219_s16, 128, %s221_s19, %s206_s20  }
 0x125 PF: > { %p296_p4 = scmp.ge.s32.totalorder %s398_s15, 2  ;;  %s232_s29 = sand.u32 1, %s386_s12  }
 0x126   : > { %s233_s5 = scalar_lea.sflag [#allocation3], %s232_s29 }
 0x127   : > { %p293_p7 = pnand %p296_p4, %p463_p6 }
 0x129   : > { %p294_p8 = pneg %p293_p7 }
 0x12b   : > { %381 = dma.done.wait (%p294_p8), %s233_s5, 128  }
 0x12c   : > { %383 = vsyncadd (%p294_p8), %s233_s5, 4294967168  ;;  %p13_p9 = scmp.ge.s32.totalorder %s446_s18, 4   ;;  %s518_s12 = smov %s390_s13 }
 0x12d   : > { %s519_s13 = smov %s394_s14  ;;  %s520_s14 = smov %s457_s21 }
 0x12e   : > { %s521_s15 = smov %s446_s18  ;;  %15 = sbr.rel (!%p13_p9) target bundleno = 3 (0x3), region = 67 }
 0x133   :  { %239 = vsyncpa [#allocation3], 1 }
 0x134   :  { %241 = vsyncpa [#allocation3 + $0x1], 1 }

// kernel: encode_transformer_forward.7
= control target key start
LH: loop header
LB: loop body
LE: loop exit
PB: predicated region body
PF: predicated region fallthrough
CT: control target
= control target key end

     0   :  { %13 = vsyncpa [#allocation3], 0  ;;  %s1339_s0 = inlined_call_operand.vmem [shape: f32[2,8,128], index: 0, kind: input, shape index: {}]   ;;  %s1340_s1 = inlined_call_operand.hbm [shape: bf16[128,384], index: 1, kind: input, shape index: {}]   ;;  %s1341_s2 = inlined_call_operand.vmem [shape: f32[1,384], index: 2, kind: input, shape index: {}]   ;;  %s1342_s3 = inlined_call_operand.hbm [shape: bf16[128,128], index: 3, kind: input, shape index: {}]   ;;  %s1343_s4 = inlined_call_operand.vmem [shape: f32[1,128], index: 4, kind: input, shape index: {}]   ;;  %s1344_s5 = inlined_call_operand.vmem [shape: f32[2,1,8], index: 5, kind: input, shape index: {}]   ;;  %s1345_s6 = inlined_call_operand.vmem [shape: f32[1,128], index: 6, kind: input, shape index: {}]   ;;  %s1346_s7 = inlined_call_operand.vmem [shape: f32[1,128], index: 7, kind: input, shape index: {}]   ;;  %s1347_s8 = inlined_call_operand.vmem [shape: f32[2,8,128], index: 8, kind: output, shape index: {}]  }
   0x1   :  { %14 = vsyncpa [#allocation5], 0  ;;  %s1246_s27 = smov 0  }
   0x2 LB: > { %s240_s30 = sshll.u32 %s1340_s1, 4  ;;  %s1255_s9 = sadd.s32 4294967295, %s1191_s27   ;;  %s1191_s27 = sphi %s1246_s27, %s20_s27   ;;  %s241_s30 = int_to_ptr.hbm [resolvable:$true] %s240_s30 }
   0x3   : > { %p891_p0 = scmp.ge.s32.totalorder %s1191_s27, 1  ;;  %p229_p1 = scmp.lt.s32.totalorder %s1191_s27, 3 }
   0x4   : > { %p1081_p2 = scmp.eq.s32.totalorder %s1255_s9, 0  ;;  %s1193_s11 = smov [#allocation2]  }
   0x5   : > { %p1260_p3 = pnand %p891_p0, %p229_p1  ;;  %s242_s12 = sshll.u32 %s1193_s11, 4  ;;  %s243_s12 = int_to_ptr.vmem [resolvable:$true] %s242_s12 }
   0x6   : > { %s257_s15 = sshll.u32 %s1342_s3, 4  ;;  %s1194_s16 = smov [#allocation4]   ;;  %s258_s15 = int_to_ptr.hbm [resolvable:$true] %s257_s15 }
   0x7   : > { %p1074_p4 = pneg %p1260_p3  ;;  %s259_s17 = sshll.u32 %s1194_s16, 4  ;;  %s260_s17 = int_to_ptr.vmem [resolvable:$true] %s259_s17 }
   0x8   : > { %s1195_s18 = smov 192   ;;  %s1196_s19 = smov 12  }
   0x9   : > { %p1075_p5 = pnand %p1081_p2, %p1074_p4  ;;  %s1197_s20 = smov 64  }
   0xa   : > { %s1198_s21 = smov 4   ;;  %297 = sbr.rel (%p1260_p3) target bundleno = 1628 (0x65c), region = 52 }
   0xb   : > { %1077 = dma.hbm_to_vmem [thread:$0]  (!%p1075_p5), %s241_s30, 3072, %s243_s12, [#allocation3], %s1195_s18, %s1195_s18, %s1196_s19  }
   0xc   : > { %1080 = dma.hbm_to_vmem [thread:$0]  (!%p1075_p5), %s258_s15, 1024, %s260_s17, [#allocation5], %s1197_s20, %s1197_s20, %s1198_s21  }
   0xf   : > { %1182 = dma.done.wait (%p1081_p2), [#allocation3], 3072  }
  0x10   : > { %1184 = vsyncadd (%p1081_p2), [#allocation3], 4294964224 }
  0x11   : > { %1186 = dma.done.wait (%p1081_p2), [#allocation5], 1024  }
  0x12   : > { %1188 = vsyncadd (%p1081_p2), [#allocation5], 4294966272  ;;  %v986_v0 = vld [vmem:[#allocation2 + $0xa8] sm:$0xf]  ;;  %v1056_v1 = vld [vmem:[#allocation2 + $0xb0] sm:$0xf0] }
  0x13   : > { %v1055_v2 = vld [vmem:[#allocation2 + $0xac] sm:$0xf]  ;;  %v987_v3 = vor.u32 %v1056_v1, %v986_v0  ;;  %v988_v4 = vld [vmem:[#allocation2 + $0xb4] sm:$0xf0]  ;;  %v974_v5 = vld [vmem:[#allocation2 + $0x90] sm:$0xf] }
  0x14   : > { %v1053_v6 = vld [vmem:[#allocation2 + $0x98] sm:$0xf0]  ;;  %v991_v7 = vor.u32 %v1055_v2, %v988_v4  ;;  %v1052_v8 = vld [vmem:[#allocation2 + $0x94] sm:$0xf]  ;;  %v976_v9 = vld [vmem:[#allocation2 + $0x9c] sm:$0xf0] }
  0x15   : > { %520 = vmatpush.bf16.msra.mxu0 %v987_v3  ;;  %v975_v10 = vor.u32 %v1053_v6, %v974_v5  ;;  %v979_v11 = vor.u32 %v1052_v8, %v976_v9  ;;  %v962_v12 = vld [vmem:[#allocation2 + $0x78] sm:$0xf]  ;;  %v1050_v13 = vld [vmem:[#allocation2 + $0x80] sm:$0xf0]  ;;  %v1049_v14 = vld [vmem:[#allocation2 + $0x7c] sm:$0xf] }
  0x16   : > { %533 = vmatpush.bf16.msra.mxu1 %v991_v7  ;;  %v964_v15 = vld [vmem:[#allocation2 + $0x84] sm:$0xf0]  ;;  %v963_v16 = vor.u32 %v1050_v13, %v962_v12  ;;  %v950_v18 = vld [vmem:[#allocation2 + $0x60] sm:$0xf]  ;;  %v1047_v19 = vld [vmem:[#allocation2 + $0x68] sm:$0xf0] }
  0x17   : > { %v967_v17 = vor.u32 %v1049_v14, %v964_v15  ;;  %v1046_v20 = vld [vmem:[#allocation2 + $0x64] sm:$0xf]  ;;  %v952_v21 = vld [vmem:[#allocation2 + $0x6c] sm:$0xf0]  ;;  %p338_p6 = scmp.lt.s32.totalorder %s1255_s9, 1  ;;  %v951_v22 = vor.u32 %v1047_v19, %v950_v18  ;;  %vm567_vm0 = vcmask 523264  }
  0x18   : > { %v994_v23 = vld [vmem:[#allocation2 + $0xb0] sm:$0xf]  ;;  %v1057_v24 = vld [vmem:[#allocation2 + $0xb8] sm:$0xf0]  ;;  %v982_v25 = vld [vmem:[#allocation2 + $0x98] sm:$0xf]  ;;  %v955_v26 = vor.u32 %v1046_v20, %v952_v21 }
  0x19   : > { %521 = vmatpush.bf16.msra.mxu0 %v975_v10  ;;  %v938_v27 = vld [vmem:[#allocation2 + $0x48] sm:$0xf]  ;;  %v1044_v28 = vld [vmem:[#allocation2 + $0x50] sm:$0xf0]  ;;  %v995_v29 = vor.u32 %v1057_v24, %v994_v23  ;;  %v1054_v30 = vld [vmem:[#allocation2 + $0xa0] sm:$0xf0] }
  0x1a   : > { %534 = vmatpush.bf16.msra.mxu1 %v979_v11  ;;  %v1043_v31 = vld [vmem:[#allocation2 + $0x4c] sm:$0xf]  ;;  %v940_v32 = vld [vmem:[#allocation2 + $0x54] sm:$0xf0]  ;;  %s1350_s9 = smov (!%p338_p6, %s1255_s9), 1  ;;  %v983_v33 = vor.u32 %v1054_v30, %v982_v25  ;;  %v939_v34 = vor.u32 %v1044_v28, %v938_v27  ;;  %s1199_s11 = smov 64  }
  0x1b   : > { %546 = vmatpush.bf16.msra.mxu2 %v995_v29  ;;  %v926_v35 = vld [vmem:[#allocation2 + $0x30] sm:$0xf]  ;;  %v970_v36 = vld [vmem:[#allocation2 + $0x80] sm:$0xf]  ;;  %v1051_v37 = vld [vmem:[#allocation2 + $0x88] sm:$0xf0]  ;;  %v943_v38 = vor.u32 %v1043_v31, %v940_v32  ;;  %s344_s10 = scalar_lea.vmem %s1344_s5, %s1350_s9 }
  0x1c   : > { %v1041_v39 = vld [vmem:[#allocation2 + $0x38] sm:$0xf0]  ;;  %v1040_v40 = vld [vmem:[#allocation2 + $0x34] sm:$0xf]  ;;  %v928_v41 = vld [vmem:[#allocation2 + $0x3c] sm:$0xf0]  ;;  %v971_v42 = vor.u32 %v1051_v37, %v970_v36 }
  0x1d   : > { %522 = vmatpush.bf16.msra.mxu0 %v963_v16  ;;  %v927_v43 = vor.u32 %v1041_v39, %v926_v35  ;;  %v958_v44 = vld [vmem:[#allocation2 + $0x68] sm:$0xf]  ;;  %v1048_v45 = vld [vmem:[#allocation2 + $0x70] sm:$0xf0]  ;;  %v931_v46 = vor.u32 %v1040_v40, %v928_v41  ;;  %v914_v47 = vld [vmem:[#allocation2 + $0x18] sm:$0xf] }
  0x1e   : > { %535 = vmatpush.bf16.msra.mxu1 %v967_v17  ;;  %v1038_v48 = vld [vmem:[#allocation2 + $0x20] sm:$0xf0]  ;;  %v1037_v49 = vld [vmem:[#allocation2 + $0x1c] sm:$0xf]  ;;  %v916_v50 = vld [vmem:[#allocation2 + $0x24] sm:$0xf0]  ;;  %v959_v51 = vor.u32 %v1048_v45, %v958_v44 }
  0x1f   : > { %547 = vmatpush.bf16.msra.mxu2 %v983_v33  ;;  %s898_s22 = sshll.u32 %s1350_s9, 3  ;;  %v915_v52 = vor.u32 %v1038_v48, %v914_v47  ;;  %v946_v53 = vld [vmem:[#allocation2 + $0x50] sm:$0xf]  ;;  %v1045_v54 = vld [vmem:[#allocation2 + $0x58] sm:$0xf0]  ;;  %v919_v55 = vor.u32 %v1037_v49, %v916_v50  ;;  %vm603_vm1 = vcmask 1043456  }
  0x20   : > { %v902_v56 = vld [vmem:[#allocation2] sm:$0xf]  ;;  %v1035_v57 = vld [vmem:[#allocation2 + $0x8] sm:$0xf0]  ;;  %s341_s25 = scalar_lea.vmem %s1339_s0, %s898_s22  ;;  %v1034_v58 = vld [vmem:[#allocation2 + $0x4] sm:$0xf]  ;;  %v947_v60 = vor.u32 %v1045_v54, %v946_v53  ;;  %s348_s20 = scalar_lea.vmem %s1347_s8, %s898_s22 }
  0x21   : > { %523 = vmatpush.bf16.msra.mxu0 %v951_v22  ;;  %v904_v59 = vld [vmem:[#allocation2 + $0xc] sm:$0xf0]  ;;  %v903_v61 = vor.u32 %v1035_v57, %v902_v56  ;;  %v1293_v62 = vld [vmem:[%s341_s25] sm:$0xff]  ;;  %v934_v63 = vld [vmem:[#allocation2 + $0x38] sm:$0xf]  ;;  %vm587_vm2 = vcmask 64512  }
  0x22   : > { %536 = vmatpush.bf16.msra.mxu1 %v955_v26  ;;  %v1042_v0 = vld [vmem:[#allocation2 + $0x40] sm:$0xf0]  ;;  %v907_v1 = vor.u32 %v1034_v58, %v904_v59  ;;  %v351_v2 = vpack.c.bf16 %v1293_v62, %v1293_v62  ;;  %v922_v4 = vld [vmem:[#allocation2 + $0x20] sm:$0xf]  ;;  %v1039_v5 = vld [vmem:[#allocation2 + $0x28] sm:$0xf0] }
  0x23   : > { %548 = vmatpush.bf16.msra.mxu2 %v971_v42  ;;  %v935_v3 = vor.u32 %v1042_v0, %v934_v63  ;;  %v923_v6 = vor.u32 %v1039_v5, %v922_v4  ;;  %v910_v7 = vld [vmem:[#allocation2 + $0x8] sm:$0xf]  ;;  %v1036_v8 = vld [vmem:[#allocation2 + $0x10] sm:$0xf0]  ;;  %v384_v10 = vld [vmem:[%s1341_s2] sm:$0x7] }
  0x24   : > { %v911_v9 = vor.u32 %v1036_v8, %v910_v7  ;;  %v386_v11 = vperm.slane %v384_v10, 0  ;;  %v387_v12 = vperm.slane %v384_v10, 1  ;;  %v388_v25 = vperm.slane %v384_v10, 2  ;;  %v1101_v31 = vld [vmem:[%s344_s10] ss:$0 sm:$0xff]  ;;  %v1065_v0 = vld [vmem:[#allocation4 + $0x38] sm:$0xff] }
  0x25   : > { %524 = vmatpush.bf16.msra.mxu0 %v939_v34  ;;  %v1061_v4 = vld [vmem:[#allocation4 + $0x18] sm:$0xff]  ;;  %v1060_v5 = vld [vmem:[#allocation4 + $0x10] sm:$0xff] }
  0x26   : > { %537 = vmatpush.bf16.msra.mxu1 %v943_v38 }
  0x27   : > { %549 = vmatpush.bf16.msra.mxu2 %v959_v51 }
  0x29   : > { %525 = vmatpush.bf16.msra.mxu0 %v927_v43 }
  0x2a   : > { %538 = vmatpush.bf16.msra.mxu1 %v931_v46 }
  0x2b   : > { %550 = vmatpush.bf16.msra.mxu2 %v947_v60 }
  0x2d   : > { %526 = vmatpush.bf16.msra.mxu0 %v915_v52 }
  0x2e   : > { %539 = vmatpush.bf16.msra.mxu1 %v919_v55 }
  0x2f   : > { %551 = vmatpush.bf16.msra.mxu2 %v935_v3  ;;  %v1062_v3 = vld [vmem:[#allocation4 + $0x20] sm:$0xff] }
  0x31   : > { %527 = vmatpush.bf16.msra.mxu0 %v903_v61 }
  0x32   : > { %540 = vmatpush.bf16.msra.mxu1 %v907_v1  ;;  %v1064_v1 = vld [vmem:[#allocation4 + $0x30] sm:$0xff] }
  0x33   : > { %552 = vmatpush.bf16.msra.mxu2 %v923_v6  ;;  %v1059_v6 = vld [vmem:[#allocation4 + $0x8] sm:$0xff] }
  0x34   : > { %528 = vmatmul.bf16.vlgmr.msra.gmra.mxu0 %v351_v2 }
  0x35   : > { %541 = vmatmul.bf16.vlgmr.msra.gmra.mxu1 %v351_v2 }
  0x36   : > { %753 = vmatpush.bf16.msrb.mxu1 %v1065_v0 }
  0x37   : > { %553 = vmatpush.bf16.msra.mxu2 %v911_v9  ;;  %v1058_v9 = vld [vmem:[#allocation4] sm:$0xff] }
  0x3a   : > { %554 = vmatmul.bf16.vlgmr.msra.gmra.mxu2 %v351_v2  ;;  %754 = vmatpush.bf16.msrb.mxu1 %v1064_v1  ;;  %v1063_v2 = vld [vmem:[#allocation4 + $0x28] sm:$0xff] }
  0x3e   : > { %755 = vmatpush.bf16.msrb.mxu1 %v1063_v2 }
  0x42   : > { %756 = vmatpush.bf16.msrb.mxu1 %v1062_v3 }
  0x46   : > { %757 = vmatpush.bf16.msrb.mxu1 %v1061_v4 }
  0x4a   : > { %758 = vmatpush.bf16.msrb.mxu1 %v1060_v5 }
  0x4e   : > { %759 = vmatpush.bf16.msrb.mxu1 %v1059_v6 }
  0x52   : > { %760 = vmatpush.bf16.msrb.mxu1 %v1058_v9 }
  0xb1   : > { %v529_v13 = vpop.f32.mrf.mxu0 }
  0xb2   : > { %v542_v14 = vpop.f32.mrf.mxu1  ;;  %v530_v15 = vadd.f32 %v529_v13, %v386_v11  ;;  %v1102_v13 = vld [vmem:[%s1343_s4] ss:$0 sm:$0xff] }
  0xb3   : > { %v543_v16 = vadd.f32 %v542_v14, %v387_v12 }
  0xb4   : > { %v560_v18 = vmul.f32 0.125, %v530_v15 }
  0xb5   : > { %v562_v17 = vpack.c.bf16 %v543_v16, %v543_v16 }
  0xb6   : > { %v561_v22 = vpack.c.bf16 %v560_v18, %v560_v18  ;;  %v1200_v18 = vmov 128.0  }
  0xb7   : > { %624 = vrot.lane.b32.xlu1 %v562_v17, %s1199_s11  ;;  %v572_v19 = vsel %vm567_vm0, %v562_v17, 0 }
  0xb8   : > { %581 = vmatpush.bf16.xpose.msra.mxu3 %v572_v19 }
  0xb9   : > { %v531_v20 = vpop.f32.mrf.mxu0 }
  0xba   : > { %v544_v21 = vpop.f32.mrf.mxu1 }
  0xbd   : > { %v555_v23 = vpop.f32.mrf.mxu2 }
  0xbe   : > { %v556_v26 = vadd.f32 %v555_v23, %v388_v25 }
  0xbf   : > { %621 = vrot.lane.b32.xlu1 %v561_v22, %s1199_s11  ;;  %996 = vmatmul.msk.bf16.vlgmr.msra.gmra.mxu3 %vm567_vm0, %v561_v22 }
  0xc0   : > { %v563_v27 = vpack.c.bf16 %v556_v26, %v556_v26 }
  0xc2   : > { %v605_v28 = vsel %vm603_vm1, %v563_v27, 0 }
  0xc3   : > { %614 = vmatpush.bf16.msrb.mxu3 %v605_v28 }
  0xc5   : > { %v557_v24 = vpop.f32.mrf.mxu2 }
 0x129   : > { %v625_v29 = vpop.permute.xlu1 %624 }
 0x12a   : > { %v630_v30 = vsel %vm567_vm0, %v625_v29, 0 }
 0x12b   : > { %639 = vmatpush.bf16.xpose.msra.mxu3 %v630_v30 }
 0x131   : > { %v622_v47 = vpop.permute.xlu1 %621 }
 0x142   : > { %v583_v32 = vpop.f32.mrf.mxu3 }
 0x143   : > { %v584_v33 = vadd.f32 %v1101_v31, %v583_v32 }
 0x145   : > { %v588_v34 = vsel %vm587_vm2, %v584_v33, -inf }
 0x146   : > { %589 = vmax.xlane.f32.xlu0 %v588_v34 }
 0x14a   : > { %v585_v35 = vpop.f32.mrf.mxu3 }
 0x1b9   : > { %v590_v36 = vpop.xlane.xlu0 %589 }
 0x1ba   : > { %v591_v37 = vsub.f32 %v584_v33, %v590_v36 }
 0x1bc   : > { %v592_v38 = vmul.f32 1.442695, %v591_v37  ;;  %v1103_v37 = vld [vmem:[%s1345_s6] ss:$0 sm:$0xff] }
 0x1be   : > { %1105 = vpow2.f32 %v592_v38 }
 0x1c4   : > { %v1106_v39 = vpop.eup %1105 }
 0x1c5   : > { %v594_v40 = vsel %vm587_vm2, %v1106_v39, 0.0 }
 0x1c6   : > { %595 = vadd.xlane.f32.xlu0 %v594_v40 }
 0x1da   : > { %658 = vrot.lane.b32.xlu0 %v563_v27, %s1199_s11 }
 0x239   : > { %v596_v41 = vpop.xlane.xlu0 %595 }
 0x23a   : > { %1107 = vrcp.f32 %v596_v41 }
 0x240   : > { %v1108_v42 = vpop.eup %1107 }
 0x241   : > { %v598_v43 = vmul.f32 %v1108_v42, %v1106_v39  ;;  %v1104_v39 = vld [vmem:[%s1346_s7] ss:$0 sm:$0xff] }
 0x243   : > { %v599_v44 = vpack.c.bf16 %v598_v43, %v598_v43 }
 0x245   : > { %997 = vmatmul.msk.bf16.vlgmr.msrb.gmra.mxu3 %vm587_vm2, %v599_v44 }
 0x24c   : > { %v659_v45 = vpop.permute.xlu0 %658 }
 0x24d   : > { %v664_v46 = vsel %vm603_vm1, %v659_v45, 0 }
 0x24e   : > { %673 = vmatpush.bf16.msrb.mxu0 %v664_v46 }
 0x255   : > { %998 = vmatmul.msk.bf16.vlgmr.msra.gmra.mxu3 %vm567_vm0, %v622_v47 }
 0x2c8   : > { %v616_v48 = vpop.f32.mrf.mxu3 }
 0x2d0   : > { %v618_v49 = vpop.f32.mrf.mxu3 }
 0x2d8   : > { %v641_v50 = vpop.f32.mrf.mxu3 }
 0x2d9   : > { %v642_v51 = vadd.f32 %v1101_v31, %v641_v50 }
 0x2db   : > { %v645_v52 = vsel %vm587_vm2, %v642_v51, -inf }
 0x2dc   : > { %646 = vmax.xlane.f32.xlu2 %v645_v52 }
 0x2e0   : > { %v643_v53 = vpop.f32.mrf.mxu3 }
 0x34f   : > { %v647_v54 = vpop.xlane.xlu2 %646 }
 0x350   : > { %v648_v55 = vsub.f32 %v642_v51, %v647_v54 }
 0x352   : > { %v649_v56 = vmul.f32 1.442695, %v648_v55 }
 0x354   : > { %1109 = vpow2.f32 %v649_v56 }
 0x35a   : > { %v1110_v57 = vpop.eup %1109 }
 0x35b   : > { %v651_v58 = vsel %vm587_vm2, %v1110_v57, 0.0 }
 0x35c   : > { %652 = vadd.xlane.f32.xlu2 %v651_v58 }
 0x3cf   : > { %v653_v59 = vpop.xlane.xlu2 %652 }
 0x3d0   : > { %1111 = vrcp.f32 %v653_v59 }
 0x3d1   : > { %1113 = vrcp.f32 %v1200_v18 }
 0x3d6   : > { %v1112_v60 = vpop.eup %1111 }
 0x3d7   : > { %v655_v61 = vmul.f32 %v1112_v60, %v1110_v57  ;;  %v1114_v19 = vpop.eup %1113 }
 0x3d8   : > { %v772_v20 = vmul.f32 128.0, %v1114_v19  ;;  %vm776_vm3 = vweird.f32 %v1114_v19 }
 0x3d9   : > { %v656_v63 = vpack.c.bf16 %v655_v61, %v655_v61 }
 0x3da   : > { %v773_v21 = vsub.f32 1.0, %v772_v20 }
 0x3db   : > { %999 = vmatmul.msk.bf16.vlgmr.msrb.gmra.mxu0 %vm587_vm2, %v656_v63 }
 0x3dc   : > { %v774_v22 = vmul.f32 %v1114_v19, %v773_v21 }
 0x3de   : > { %v775_v23 = vadd.f32 %v1114_v19, %v774_v22 }
 0x3e0   : > { %v777_v24 = vsel %vm776_vm3, %v1114_v19, %v775_v23 }
 0x458   : > { %v675_v7 = vpop.f32.mrf.mxu0 }
 0x459   : > { %680 = vrot.lane.b32.xlu1 %v675_v7, %s1199_s11 }
 0x460   : > { %v677_v8 = vpop.f32.mrf.mxu0 }
 0x4cb   : > { %v681_v10 = vpop.permute.xlu1 %680 }
 0x4cc   : > { %v683_v11 = vsel %vm567_vm0, %v616_v48, %v681_v10 }
 0x4cd   : > { %v684_v12 = vpack.c.bf16 %v683_v11, %v683_v11 }
 0x4cf   : > { %761 = vmatmul.bf16.vlgmr.msrb.gmra.mxu1 %v684_v12 }
 0x54c   : > { %v762_v14 = vpop.f32.mrf.mxu1 }
 0x54d   : > { %v763_v15 = vadd.f32 %v1102_v13, %v762_v14 }
 0x54f   : > { %v766_v16 = vadd.f32 %v763_v15, %v1293_v62 }
 0x551   : > { %769 = vadd.xlane.f32.xlu2 %v766_v16 }
 0x554   : > { %v764_v17 = vpop.f32.mrf.mxu1 }
 0x5c4   : > { %v770_v25 = vpop.xlane.xlu2 %769 }
 0x5c5   : > { %v778_v26 = vmul.f32 %v777_v24, %v770_v25 }
 0x5c7   : > { %v779_v27 = vsub.f32 %v766_v16, %v778_v26 }
 0x5c9   : > { %v780_v28 = vmul.f32 %v779_v27, %v779_v27 }
 0x5cb   : > { %781 = vadd.xlane.f32.xlu1 %v780_v28 }
 0x63e   : > { %v782_v29 = vpop.xlane.xlu1 %781 }
 0x63f   : > { %v783_v30 = vmul.f32 %v782_v29, %v777_v24 }
 0x641   : > { %v784_v31 = vadd.f32 1e-05, %v783_v30 }
 0x643   : > { %1115 = vrsqrt.f32 %v784_v31  ;;  %vm791_vm5 = vweird.f32 %v784_v31 }
 0x649   : > { %v1116_v62 = vpop.eup %1115 }
 0x64a   : > { %v786_v32 = vmul.f32 %v1116_v62, %v784_v31  ;;  %vm792_vm4 = vweird.f32 %v1116_v62 }
 0x64b   : > { %vm793_vm6 = vmor %vm791_vm5, %vm792_vm4 }
 0x64c   : > { %v787_v33 = vmul.f32 %v1116_v62, %v786_v32 }
 0x64e   : > { %v788_v34 = vmul.f32 0.5, %v787_v33 }
 0x650   : > { %v789_v35 = vsub.f32 1.5, %v788_v34 }
 0x652   : > { %v790_v36 = vmul.f32 %v1116_v62, %v789_v35 }
 0x654   : > { %v794_v38 = vsel %vm793_vm6, %v1116_v62, %v790_v36 }
 0x655   : > { %v795_v40 = vmul.f32 %v794_v38, %v779_v27 }
 0x657   : > { %v799_v41 = vmul.f32 %v1103_v37, %v795_v40 }
 0x659   : > { %v803_v42 = vadd.f32 %v1104_v39, %v799_v41 }
 0x65b   : > { %804 = vst [vmem:[%s348_s20] sm:$0xff] %v803_v42 }
 0x65c PF: > { %s20_s27 = sadd.s32 1, %s1191_s27  }
 0x65d   : > { %p17_p7 = scmp.ge.s32.totalorder %s20_s27, 4  }
 0x65f   :  { %19 = sbr.rel (!%p17_p7) target bundleno = 2 (0x2), region = 94 }
 0x664   :  { %824 = vsyncpa [#allocation3], 1 }
 0x665   :  { %826 = vsyncpa [#allocation3 + $0x1], 1 }
 0x666   :  { %827 = vsyncpa [#allocation5], 1 }

// kernel: encode_transformer_forward.6
= control target key start
LH: loop header
LB: loop body
LE: loop exit
PB: predicated region body
PF: predicated region fallthrough
CT: control target
= control target key end

     0   :  { %12 = vsyncpa [#allocation3], 0  ;;  %s1116_s0 = inlined_call_operand.vmem [shape: f32[16,128], index: 0, kind: input, shape index: {}]   ;;  %s1117_s1 = inlined_call_operand.hbm [shape: bf16[128,256], index: 1, kind: input, shape index: {}]   ;;  %s1118_s2 = inlined_call_operand.vmem [shape: f32[1,256], index: 2, kind: input, shape index: {}]   ;;  %s1119_s3 = inlined_call_operand.hbm [shape: bf16[256,128], index: 3, kind: input, shape index: {}]   ;;  %s1120_s4 = inlined_call_operand.vmem [shape: f32[1,128], index: 4, kind: input, shape index: {}]   ;;  %s1121_s5 = inlined_call_operand.vmem [shape: f32[1,128], index: 5, kind: input, shape index: {}]   ;;  %s1122_s6 = inlined_call_operand.vmem [shape: f32[1,128], index: 6, kind: input, shape index: {}]   ;;  %s1123_s7 = inlined_call_operand.vmem [shape: f32[16,128], index: 7, kind: output, shape index: {}]  }
   0x1   :  { %13 = vsyncpa [#allocation5], 0  ;;  %s1051_s24 = smov 0  }
   0x2 LB: > { %s213_s27 = sshll.u32 %s1117_s1, 4  ;;  %s1060_s28 = sadd.s32 4294967295, %s1002_s24   ;;  %s1002_s24 = sphi %s1051_s24, %s19_s24   ;;  %s214_s27 = int_to_ptr.hbm [resolvable:$true] %s213_s27 }
   0x3   : > { %p716_p0 = scmp.ge.s32.totalorder %s1002_s24, 1  ;;  %p202_p1 = scmp.lt.s32.totalorder %s1002_s24, 3 }
   0x4   : > { %p902_p2 = scmp.eq.s32.totalorder %s1060_s28, 0  ;;  %s1004_s30 = smov [#allocation2]  }
   0x5   : > { %p1065_p3 = pnand %p716_p0, %p202_p1  ;;  %s215_s8 = sshll.u32 %s1004_s30, 4  ;;  %s216_s8 = int_to_ptr.vmem [resolvable:$true] %s215_s8 }
   0x6   : > { %s230_s11 = sshll.u32 %s1119_s3, 4  ;;  %s1005_s12 = smov [#allocation4]   ;;  %s231_s11 = int_to_ptr.hbm [resolvable:$true] %s230_s11 }
   0x7   : > { %p895_p4 = pneg %p1065_p3  ;;  %s232_s13 = sshll.u32 %s1005_s12, 4  ;;  %s233_s13 = int_to_ptr.vmem [resolvable:$true] %s232_s13 }
   0x8   : > { %s1006_s14 = smov 128   ;;  %s1007_s15 = smov 8  }
   0x9   : > { %p896_p5 = pnand %p902_p2, %p895_p4  ;;  %s1008_s16 = smov 64  }
   0xa   : > { %s1009_s17 = smov 4   ;;  %264 = sbr.rel (%p1065_p3) target bundleno = 589 (0x24d), region = 48 }
   0xb   : > { %898 = dma.hbm_to_vmem [thread:$0]  (!%p896_p5), %s214_s27, 2048, %s216_s8, [#allocation3], %s1006_s14, %s1006_s14, %s1007_s15  }
   0xc   : > { %901 = dma.hbm_to_vmem [thread:$0]  (!%p896_p5), %s231_s11, 2048, %s233_s13, [#allocation5], %s1008_s16, %s1008_s16, %s1009_s17  }
   0xf   : > { %993 = dma.done.wait (%p902_p2), [#allocation3], 2048  }
  0x10   : > { %995 = vsyncadd (%p902_p2), [#allocation3], 4294965248 }
  0x11   : > { %997 = dma.done.wait (%p902_p2), [#allocation5], 2048  }
  0x12   : > { %999 = vsyncadd (%p902_p2), [#allocation5], 4294965248  ;;  %v783_v0 = vld [vmem:[#allocation2 + $0x70] sm:$0xf]  ;;  %v870_v1 = vld [vmem:[#allocation2 + $0x74] sm:$0xf0] }
  0x13   : > { %v869_v2 = vld [vmem:[#allocation2 + $0x74] sm:$0xf]  ;;  %v784_v3 = vor.u32 %v870_v1, %v783_v0  ;;  %v785_v4 = vld [vmem:[#allocation2 + $0x78] sm:$0xf0]  ;;  %v775_v5 = vld [vmem:[#allocation2 + $0x60] sm:$0xf] }
  0x14   : > { %v868_v6 = vld [vmem:[#allocation2 + $0x64] sm:$0xf0]  ;;  %v788_v7 = vor.u32 %v869_v2, %v785_v4  ;;  %v867_v8 = vld [vmem:[#allocation2 + $0x64] sm:$0xf]  ;;  %v777_v9 = vld [vmem:[#allocation2 + $0x68] sm:$0xf0] }
  0x15   : > { %412 = vmatpush.bf16.msra.mxu0 %v784_v3  ;;  %v776_v10 = vor.u32 %v868_v6, %v775_v5  ;;  %v780_v11 = vor.u32 %v867_v8, %v777_v9  ;;  %v767_v12 = vld [vmem:[#allocation2 + $0x50] sm:$0xf]  ;;  %v866_v13 = vld [vmem:[#allocation2 + $0x54] sm:$0xf0]  ;;  %v865_v14 = vld [vmem:[#allocation2 + $0x54] sm:$0xf] }
  0x16   : > { %425 = vmatpush.bf16.msra.mxu1 %v788_v7  ;;  %v769_v15 = vld [vmem:[#allocation2 + $0x58] sm:$0xf0]  ;;  %v768_v16 = vor.u32 %v866_v13, %v767_v12  ;;  %v759_v18 = vld [vmem:[#allocation2 + $0x40] sm:$0xf]  ;;  %v864_v19 = vld [vmem:[#allocation2 + $0x44] sm:$0xf0] }
  0x17   : > { %v772_v17 = vor.u32 %v865_v14, %v769_v15  ;;  %v863_v20 = vld [vmem:[#allocation2 + $0x44] sm:$0xf]  ;;  %v761_v21 = vld [vmem:[#allocation2 + $0x48] sm:$0xf0]  ;;  %v760_v22 = vor.u32 %v864_v19, %v759_v18  ;;  %v878_v23 = vld [vmem:[#allocation4 + $0x38] sm:$0xff]  ;;  %p300_p6 = scmp.lt.s32.totalorder %s1060_s28, 1 }
  0x18   : > { %v886_v24 = vld [vmem:[#allocation4 + $0x78] sm:$0xff]  ;;  %v764_v25 = vor.u32 %v863_v20, %v761_v21  ;;  %v751_v26 = vld [vmem:[#allocation2 + $0x30] sm:$0xf]  ;;  %v861_v28 = vld [vmem:[#allocation2 + $0x34] sm:$0xf]  ;;  %574 = vmatpush.bf16.msra.mxu2 %v878_v23  ;;  %v1010_v23 = vmov 128.0  }
  0x19   : > { %413 = vmatpush.bf16.msra.mxu0 %v776_v10  ;;  %v862_v27 = vld [vmem:[#allocation2 + $0x34] sm:$0xf0]  ;;  %v753_v29 = vld [vmem:[#allocation2 + $0x38] sm:$0xf0]  ;;  %587 = vmatpush.bf16.msra.mxu3 %v886_v24  ;;  %v877_v30 = vld [vmem:[#allocation4 + $0x30] sm:$0xff]  ;;  %s1126_s28 = smov (!%p300_p6, %s1060_s28), 1  ;;  %924 = vrcp.f32 %v1010_v23 }
  0x1a   : > { %426 = vmatpush.bf16.msra.mxu1 %v780_v11  ;;  %v885_v31 = vld [vmem:[#allocation4 + $0x70] sm:$0xff]  ;;  %v752_v32 = vor.u32 %v862_v27, %v751_v26  ;;  %v743_v33 = vld [vmem:[#allocation2 + $0x20] sm:$0xf]  ;;  %v756_v34 = vor.u32 %v861_v28, %v753_v29  ;;  %v860_v35 = vld [vmem:[#allocation2 + $0x24] sm:$0xf0]  ;;  %s723_s18 = sshll.u32 %s1126_s28, 3 }
  0x1b   : > { %v859_v36 = vld [vmem:[#allocation2 + $0x24] sm:$0xf]  ;;  %v745_v37 = vld [vmem:[#allocation2 + $0x28] sm:$0xf0]  ;;  %v744_v40 = vor.u32 %v860_v35, %v743_v33  ;;  %v735_v42 = vld [vmem:[#allocation2 + $0x10] sm:$0xf]  ;;  %s303_s21 = scalar_lea.vmem %s1116_s0, %s723_s18  ;;  %s307_s11 = scalar_lea.vmem %s1123_s7, %s723_s18 }
  0x1c   : > { %575 = vmatpush.bf16.msra.mxu2 %v877_v30  ;;  %v876_v38 = vld [vmem:[#allocation4 + $0x28] sm:$0xff]  ;;  %v748_v41 = vor.u32 %v859_v36, %v745_v37  ;;  %v858_v43 = vld [vmem:[#allocation2 + $0x14] sm:$0xf0]  ;;  %v857_v44 = vld [vmem:[#allocation2 + $0x14] sm:$0xf] }
  0x1d   : > { %414 = vmatpush.bf16.msra.mxu0 %v768_v16  ;;  %588 = vmatpush.bf16.msra.mxu3 %v885_v31  ;;  %v884_v39 = vld [vmem:[#allocation4 + $0x68] sm:$0xff]  ;;  %v737_v45 = vld [vmem:[#allocation2 + $0x18] sm:$0xf0]  ;;  %v875_v46 = vld [vmem:[#allocation4 + $0x20] sm:$0xff]  ;;  %v736_v48 = vor.u32 %v858_v43, %v735_v42 }
  0x1e   : > { %427 = vmatpush.bf16.msra.mxu1 %v772_v17  ;;  %v883_v47 = vld [vmem:[#allocation4 + $0x60] sm:$0xff]  ;;  %v740_v49 = vor.u32 %v857_v44, %v737_v45  ;;  %v856_v51 = vld [vmem:[#allocation2 + $0x4] sm:$0xf0]  ;;  %v729_v53 = vld [vmem:[#allocation2 + $0x8] sm:$0xf0] }
  0x1f   : > { %v727_v50 = vld [vmem:[#allocation2] sm:$0xf]  ;;  %v855_v52 = vld [vmem:[#allocation2 + $0x4] sm:$0xf]  ;;  %v874_v54 = vld [vmem:[#allocation4 + $0x18] sm:$0xff]  ;;  %v925_v24 = vpop.eup %924 }
  0x20   : > { %576 = vmatpush.bf16.msra.mxu2 %v876_v38  ;;  %v882_v55 = vld [vmem:[#allocation4 + $0x58] sm:$0xff]  ;;  %v728_v56 = vor.u32 %v856_v51, %v727_v50  ;;  %v308_v57 = vld [vmem:[%s303_s21] sm:$0xff]  ;;  %v732_v58 = vor.u32 %v855_v52, %v729_v53  ;;  %v873_v59 = vld [vmem:[#allocation4 + $0x10] sm:$0xff]  ;;  %vm610_vm0 = vweird.f32 %v925_v24 }
  0x21   : > { %415 = vmatpush.bf16.msra.mxu0 %v760_v22  ;;  %589 = vmatpush.bf16.msra.mxu3 %v884_v39  ;;  %v881_v60 = vld [vmem:[#allocation4 + $0x50] sm:$0xff]  ;;  %v309_v61 = vpack.c.bf16 %v308_v57, %v308_v57  ;;  %v872_v62 = vld [vmem:[#allocation4 + $0x8] sm:$0xff]  ;;  %v871_v0 = vld [vmem:[#allocation4] sm:$0xff] }
  0x22   : > { %428 = vmatpush.bf16.msra.mxu1 %v764_v25  ;;  %v880_v63 = vld [vmem:[#allocation4 + $0x48] sm:$0xff]  ;;  %v879_v1 = vld [vmem:[#allocation4 + $0x40] sm:$0xff]  ;;  %v606_v25 = vmul.f32 128.0, %v925_v24 }
  0x23   : > { %v326_v2 = vld [vmem:[%s1118_s2] sm:$0x3] }
  0x24   : > { %577 = vmatpush.bf16.msra.mxu2 %v875_v46  ;;  %v328_v3 = vperm.slane %v326_v2, 0  ;;  %v329_v4 = vperm.slane %v326_v2, 1  ;;  %v921_v15 = vld [vmem:[%s1120_s4] ss:$0 sm:$0xff]  ;;  %v607_v26 = vsub.f32 1.0, %v606_v25 }
  0x25   : > { %416 = vmatpush.bf16.msra.mxu0 %v752_v32  ;;  %590 = vmatpush.bf16.msra.mxu3 %v883_v47  ;;  %v922_v43 = vld [vmem:[%s1121_s5] ss:$0 sm:$0xff] }
  0x26   : > { %429 = vmatpush.bf16.msra.mxu1 %v756_v34  ;;  %v608_v27 = vmul.f32 %v925_v24, %v607_v26  ;;  %v923_v45 = vld [vmem:[%s1122_s6] ss:$0 sm:$0xff] }
  0x28   : > { %578 = vmatpush.bf16.msra.mxu2 %v874_v54  ;;  %v609_v28 = vadd.f32 %v925_v24, %v608_v27 }
  0x29   : > { %417 = vmatpush.bf16.msra.mxu0 %v744_v40  ;;  %591 = vmatpush.bf16.msra.mxu3 %v882_v55 }
  0x2a   : > { %430 = vmatpush.bf16.msra.mxu1 %v748_v41  ;;  %v611_v29 = vsel %vm610_vm0, %v925_v24, %v609_v28 }
  0x2c   : > { %579 = vmatpush.bf16.msra.mxu2 %v873_v59 }
  0x2d   : > { %418 = vmatpush.bf16.msra.mxu0 %v736_v48  ;;  %592 = vmatpush.bf16.msra.mxu3 %v881_v60 }
  0x2e   : > { %431 = vmatpush.bf16.msra.mxu1 %v740_v49 }
  0x30   : > { %580 = vmatpush.bf16.msra.mxu2 %v872_v62 }
  0x31   : > { %419 = vmatpush.bf16.msra.mxu0 %v728_v56  ;;  %593 = vmatpush.bf16.msra.mxu3 %v880_v63 }
  0x32   : > { %432 = vmatpush.bf16.msra.mxu1 %v732_v58 }
  0x34   : > { %420 = vmatmul.bf16.vlgmr.msra.gmra.mxu0 %v309_v61  ;;  %581 = vmatpush.bf16.msra.mxu2 %v871_v0 }
  0x35   : > { %433 = vmatmul.bf16.vlgmr.msra.gmra.mxu1 %v309_v61  ;;  %594 = vmatpush.bf16.msra.mxu3 %v879_v1 }
  0xb1   : > { %v421_v5 = vpop.f32.mrf.mxu0 }
  0xb2   : > { %v422_v6 = vadd.f32 %v421_v5, %v328_v3  ;;  %v434_v7 = vpop.f32.mrf.mxu1 }
  0xb3   : > { %v435_v8 = vadd.f32 %v434_v7, %v329_v4 }
  0xb4   : > { %v438_v9 = vmax.f32 %v422_v6, 0.0 }
  0xb5   : > { %v439_v10 = vmax.f32 %v435_v8, 0.0 }
  0xb6   : > { %v440_v11 = vpack.c.bf16 %v438_v9, %v438_v9 }
  0xb7   : > { %v441_v12 = vpack.c.bf16 %v439_v10, %v439_v10 }
  0xb8   : > { %582 = vmatmul.bf16.vlgmr.msra.gmra.mxu2 %v440_v11 }
  0xb9   : > { %595 = vmatmul.bf16.vlgmr.msra.gmra.mxu3 %v441_v12  ;;  %v423_v13 = vpop.f32.mrf.mxu0 }
  0xba   : > { %v436_v14 = vpop.f32.mrf.mxu1 }
 0x13b   : > { %v583_v16 = vpop.f32.mrf.mxu2 }
 0x13c   : > { %v584_v17 = vadd.f32 %v921_v15, %v583_v16  ;;  %v596_v18 = vpop.f32.mrf.mxu3 }
 0x13e   : > { %v597_v19 = vadd.f32 %v596_v18, %v584_v17 }
 0x140   : > { %v600_v20 = vadd.f32 %v597_v19, %v308_v57 }
 0x142   : > { %603 = vadd.xlane.f32.xlu0 %v600_v20 }
 0x143   : > { %v585_v21 = vpop.f32.mrf.mxu2 }
 0x144   : > { %v598_v22 = vpop.f32.mrf.mxu3 }
 0x1b5   : > { %v604_v30 = vpop.xlane.xlu0 %603 }
 0x1b6   : > { %v612_v31 = vmul.f32 %v611_v29, %v604_v30 }
 0x1b8   : > { %v613_v32 = vsub.f32 %v600_v20, %v612_v31 }
 0x1ba   : > { %v614_v33 = vmul.f32 %v613_v32, %v613_v32 }
 0x1bc   : > { %615 = vadd.xlane.f32.xlu0 %v614_v33 }
 0x22f   : > { %v616_v34 = vpop.xlane.xlu0 %615 }
 0x230   : > { %v617_v35 = vmul.f32 %v616_v34, %v611_v29 }
 0x232   : > { %v618_v36 = vadd.f32 1e-05, %v617_v35 }
 0x234   : > { %926 = vrsqrt.f32 %v618_v36  ;;  %vm625_vm2 = vweird.f32 %v618_v36 }
 0x23a   : > { %v927_v37 = vpop.eup %926 }
 0x23b   : > { %v620_v38 = vmul.f32 %v927_v37, %v618_v36  ;;  %vm626_vm1 = vweird.f32 %v927_v37 }
 0x23c   : > { %vm627_vm3 = vmor %vm625_vm2, %vm626_vm1 }
 0x23d   : > { %v621_v39 = vmul.f32 %v927_v37, %v620_v38 }
 0x23f   : > { %v622_v40 = vmul.f32 0.5, %v621_v39 }
 0x241   : > { %v623_v41 = vsub.f32 1.5, %v622_v40 }
 0x243   : > { %v624_v42 = vmul.f32 %v927_v37, %v623_v41 }
 0x245   : > { %v628_v44 = vsel %vm627_vm3, %v927_v37, %v624_v42 }
 0x246   : > { %v629_v46 = vmul.f32 %v628_v44, %v613_v32 }
 0x248   : > { %v633_v47 = vmul.f32 %v922_v43, %v629_v46 }
 0x24a   : > { %v637_v48 = vadd.f32 %v923_v45, %v633_v47 }
 0x24c   : > { %638 = vst [vmem:[%s307_s11] sm:$0xff] %v637_v48 }
 0x24d PF: > { %s19_s24 = sadd.s32 1, %s1002_s24  }
 0x24e   : > { %p16_p7 = scmp.ge.s32.totalorder %s19_s24, 4  }
 0x250   :  { %18 = sbr.rel (!%p16_p7) target bundleno = 2 (0x2), region = 87 }
 0x255   :  { %658 = vsyncpa [#allocation3], 1 }
 0x256   :  { %660 = vsyncpa [#allocation3 + $0x1], 1 }
 0x257   :  { %661 = vsyncpa [#allocation5], 1 }

// kernel: encode_transformer_forward.5
= control target key start
LH: loop header
LB: loop body
LE: loop exit
PB: predicated region body
PF: predicated region fallthrough
CT: control target
= control target key end

     0   :  { %14 = vsyncpa [#allocation3], 0  ;;  %s1374_s0 = inlined_call_operand.vmem [shape: f32[2,8,128], index: 0, kind: input, shape index: {}]   ;;  %s1375_s1 = inlined_call_operand.vmem [shape: f32[8,128], index: 1, kind: input, shape index: {}]   ;;  %s1376_s2 = inlined_call_operand.hbm [shape: bf16[128,384], index: 2, kind: input, shape index: {}]   ;;  %s1377_s3 = inlined_call_operand.vmem [shape: f32[1,384], index: 3, kind: input, shape index: {}]   ;;  %s1378_s4 = inlined_call_operand.hbm [shape: bf16[128,128], index: 4, kind: input, shape index: {}]   ;;  %s1379_s5 = inlined_call_operand.vmem [shape: f32[1,128], index: 5, kind: input, shape index: {}]   ;;  %s1380_s6 = inlined_call_operand.vmem [shape: f32[2,1,8], index: 6, kind: input, shape index: {}]   ;;  %s1381_s7 = inlined_call_operand.vmem [shape: f32[1,128], index: 7, kind: input, shape index: {}]   ;;  %s1382_s8 = inlined_call_operand.vmem [shape: f32[1,128], index: 8, kind: input, shape index: {}]   ;;  %s1383_s9 = inlined_call_operand.vmem [shape: f32[2,8,128], index: 9, kind: output, shape index: {}]  }
   0x1   :  { %15 = vsyncpa [#allocation5], 0  ;;  %s1280_s30 = smov 0  }
   0x2 LB: > { %s265_s12 = sshll.u32 %s1376_s2, 4  ;;  %s1289_s13 = sadd.s32 4294967295, %s1220_s30   ;;  %s1220_s30 = sphi %s1280_s30, %s21_s30   ;;  %s266_s12 = int_to_ptr.hbm [resolvable:$true] %s265_s12 }
   0x3   : > { %p920_p0 = scmp.ge.s32.totalorder %s1220_s30, 1  ;;  %p251_p1 = scmp.lt.s32.totalorder %s1220_s30, 3 }
   0x4   : > { %p1110_p2 = scmp.eq.s32.totalorder %s1289_s13, 0  ;;  %s1222_s15 = smov [#allocation2]  }
   0x5   : > { %p1294_p3 = pnand %p920_p0, %p251_p1  ;;  %s267_s16 = sshll.u32 %s1222_s15, 4  ;;  %s268_s16 = int_to_ptr.vmem [resolvable:$true] %s267_s16 }
   0x6   : > { %s282_s19 = sshll.u32 %s1378_s4, 4  ;;  %s1223_s20 = smov [#allocation4]   ;;  %s283_s19 = int_to_ptr.hbm [resolvable:$true] %s282_s19 }
   0x7   : > { %p1103_p4 = pneg %p1294_p3  ;;  %s284_s21 = sshll.u32 %s1223_s20, 4  ;;  %s285_s21 = int_to_ptr.vmem [resolvable:$true] %s284_s21 }
   0x8   : > { %s1224_s22 = smov 192   ;;  %s1225_s23 = smov 12  }
   0x9   : > { %p1104_p5 = pnand %p1110_p2, %p1103_p4  ;;  %s1226_s24 = smov 64  }
   0xa   : > { %s1227_s25 = smov 4   ;;  %322 = sbr.rel (%p1294_p3) target bundleno = 1628 (0x65c), region = 56 }
   0xb   : > { %1106 = dma.hbm_to_vmem [thread:$0]  (!%p1104_p5), %s266_s12, 3072, %s268_s16, [#allocation3], %s1224_s22, %s1224_s22, %s1225_s23  }
   0xc   : > { %1109 = dma.hbm_to_vmem [thread:$0]  (!%p1104_p5), %s283_s19, 1024, %s285_s21, [#allocation5], %s1226_s24, %s1226_s24, %s1227_s25  }
   0xf   : > { %1211 = dma.done.wait (%p1110_p2), [#allocation3], 3072  }
  0x10   : > { %1213 = vsyncadd (%p1110_p2), [#allocation3], 4294964224 }
  0x11   : > { %1215 = dma.done.wait (%p1110_p2), [#allocation5], 1024  }
  0x12   : > { %1217 = vsyncadd (%p1110_p2), [#allocation5], 4294966272  ;;  %v1015_v0 = vld [vmem:[#allocation2 + $0xa8] sm:$0xf]  ;;  %v1085_v1 = vld [vmem:[#allocation2 + $0xb0] sm:$0xf0] }
  0x13   : > { %v1084_v2 = vld [vmem:[#allocation2 + $0xac] sm:$0xf]  ;;  %v1016_v3 = vor.u32 %v1085_v1, %v1015_v0  ;;  %v1017_v4 = vld [vmem:[#allocation2 + $0xb4] sm:$0xf0]  ;;  %v1003_v5 = vld [vmem:[#allocation2 + $0x90] sm:$0xf] }
  0x14   : > { %v1082_v6 = vld [vmem:[#allocation2 + $0x98] sm:$0xf0]  ;;  %v1020_v7 = vor.u32 %v1084_v2, %v1017_v4  ;;  %v1081_v8 = vld [vmem:[#allocation2 + $0x94] sm:$0xf]  ;;  %v1005_v9 = vld [vmem:[#allocation2 + $0x9c] sm:$0xf0] }
  0x15   : > { %549 = vmatpush.bf16.msra.mxu0 %v1016_v3  ;;  %v1004_v10 = vor.u32 %v1082_v6, %v1003_v5  ;;  %v1008_v11 = vor.u32 %v1081_v8, %v1005_v9  ;;  %v991_v12 = vld [vmem:[#allocation2 + $0x78] sm:$0xf]  ;;  %v1079_v13 = vld [vmem:[#allocation2 + $0x80] sm:$0xf0]  ;;  %v1078_v14 = vld [vmem:[#allocation2 + $0x7c] sm:$0xf] }
  0x16   : > { %562 = vmatpush.bf16.msra.mxu1 %v1020_v7  ;;  %v993_v15 = vld [vmem:[#allocation2 + $0x84] sm:$0xf0]  ;;  %p365_p6 = scmp.lt.s32.totalorder %s1289_s13, 1  ;;  %v992_v16 = vor.u32 %v1079_v13, %v991_v12  ;;  %v979_v18 = vld [vmem:[#allocation2 + $0x60] sm:$0xf]  ;;  %vm596_vm0 = vcmask 523264  }
  0x17   : > { %v996_v17 = vor.u32 %v1078_v14, %v993_v15  ;;  %v1076_v19 = vld [vmem:[#allocation2 + $0x68] sm:$0xf0]  ;;  %v1075_v20 = vld [vmem:[#allocation2 + $0x64] sm:$0xf]  ;;  %v981_v21 = vld [vmem:[#allocation2 + $0x6c] sm:$0xf0] }
  0x18   : > { %s1386_s13 = smov (!%p365_p6, %s1289_s13), 1  ;;  %v980_v22 = vor.u32 %v1076_v19, %v979_v18  ;;  %v967_v23 = vld [vmem:[#allocation2 + $0x48] sm:$0xf]  ;;  %v1023_v24 = vld [vmem:[#allocation2 + $0xb0] sm:$0xf]  ;;  %v984_v26 = vor.u32 %v1075_v20, %v981_v21  ;;  %v378_v54 = vld [vmem:[%s1375_s1] sm:$0xff] }
  0x19   : > { %550 = vmatpush.bf16.msra.mxu0 %v1004_v10  ;;  %v1086_v25 = vld [vmem:[#allocation2 + $0xb8] sm:$0xf0]  ;;  %v1073_v27 = vld [vmem:[#allocation2 + $0x50] sm:$0xf0]  ;;  %v1011_v29 = vld [vmem:[#allocation2 + $0x98] sm:$0xf]  ;;  %s371_s17 = scalar_lea.vmem %s1380_s6, %s1386_s13 }
  0x1a   : > { %563 = vmatpush.bf16.msra.mxu1 %v1008_v11  ;;  %v1024_v28 = vor.u32 %v1086_v25, %v1023_v24  ;;  %v1083_v30 = vld [vmem:[#allocation2 + $0xa0] sm:$0xf0]  ;;  %v1072_v31 = vld [vmem:[#allocation2 + $0x4c] sm:$0xf]  ;;  %v969_v32 = vld [vmem:[#allocation2 + $0x54] sm:$0xf0]  ;;  %v968_v34 = vor.u32 %v1073_v27, %v967_v23 }
  0x1b   : > { %v1012_v33 = vor.u32 %v1083_v30, %v1011_v29  ;;  %s927_s26 = sshll.u32 %s1386_s13, 3  ;;  %v999_v35 = vld [vmem:[#allocation2 + $0x80] sm:$0xf]  ;;  %v1080_v36 = vld [vmem:[#allocation2 + $0x88] sm:$0xf0]  ;;  %v972_v37 = vor.u32 %v1072_v31, %v969_v32  ;;  %s1228_s18 = smov 64  }
  0x1c   : > { %575 = vmatpush.bf16.msra.mxu2 %v1024_v28  ;;  %v955_v38 = vld [vmem:[#allocation2 + $0x30] sm:$0xf]  ;;  %v1070_v39 = vld [vmem:[#allocation2 + $0x38] sm:$0xf0]  ;;  %v1069_v40 = vld [vmem:[#allocation2 + $0x34] sm:$0xf]  ;;  %v1000_v42 = vor.u32 %v1080_v36, %v999_v35  ;;  %s368_s29 = scalar_lea.vmem %s1374_s0, %s927_s26  ;;  %s375_s28 = scalar_lea.vmem %s1383_s9, %s927_s26 }
  0x1d   : > { %551 = vmatpush.bf16.msra.mxu0 %v992_v16  ;;  %v957_v41 = vld [vmem:[#allocation2 + $0x3c] sm:$0xf0]  ;;  %v956_v43 = vor.u32 %v1070_v39, %v955_v38  ;;  %v987_v44 = vld [vmem:[#allocation2 + $0x68] sm:$0xf]  ;;  %v1077_v45 = vld [vmem:[#allocation2 + $0x70] sm:$0xf0] }
  0x1e   : > { %564 = vmatpush.bf16.msra.mxu1 %v996_v17  ;;  %v960_v46 = vor.u32 %v1069_v40, %v957_v41  ;;  %v943_v47 = vld [vmem:[#allocation2 + $0x18] sm:$0xf]  ;;  %v1067_v48 = vld [vmem:[#allocation2 + $0x20] sm:$0xf0]  ;;  %v1066_v49 = vld [vmem:[#allocation2 + $0x1c] sm:$0xf]  ;;  %v988_v52 = vor.u32 %v1077_v45, %v987_v44 }
  0x1f   : > { %v945_v50 = vld [vmem:[#allocation2 + $0x24] sm:$0xf0]  ;;  %v377_v51 = vld [vmem:[%s368_s29] sm:$0xff]  ;;  %v944_v53 = vor.u32 %v1067_v48, %v943_v47  ;;  %v975_v55 = vld [vmem:[#allocation2 + $0x50] sm:$0xf]  ;;  %vm632_vm1 = vcmask 1043456  }
  0x20   : > { %576 = vmatpush.bf16.msra.mxu2 %v1012_v33  ;;  %v1074_v56 = vld [vmem:[#allocation2 + $0x58] sm:$0xf0]  ;;  %v948_v57 = vor.u32 %v1066_v49, %v945_v50  ;;  %v931_v58 = vld [vmem:[#allocation2] sm:$0xf]  ;;  %v1064_v59 = vld [vmem:[#allocation2 + $0x8] sm:$0xf0]  ;;  %v1328_v62 = vadd.f32 %v378_v54, %v377_v51 }
  0x21   : > { %552 = vmatpush.bf16.msra.mxu0 %v980_v22  ;;  %v1063_v60 = vld [vmem:[#allocation2 + $0x4] sm:$0xf]  ;;  %v933_v61 = vld [vmem:[#allocation2 + $0xc] sm:$0xf0]  ;;  %v976_v63 = vor.u32 %v1074_v56, %v975_v55  ;;  %v932_v0 = vor.u32 %v1064_v59, %v931_v58  ;;  %v963_v1 = vld [vmem:[#allocation2 + $0x38] sm:$0xf] }
  0x22   : > { %565 = vmatpush.bf16.msra.mxu1 %v984_v26  ;;  %v1071_v2 = vld [vmem:[#allocation2 + $0x40] sm:$0xf0]  ;;  %v936_v3 = vor.u32 %v1063_v60, %v933_v61  ;;  %v380_v4 = vpack.c.bf16 %v1328_v62, %v1328_v62  ;;  %v951_v6 = vld [vmem:[#allocation2 + $0x20] sm:$0xf]  ;;  %v1068_v7 = vld [vmem:[#allocation2 + $0x28] sm:$0xf0] }
  0x23   : > { %v964_v5 = vor.u32 %v1071_v2, %v963_v1  ;;  %v952_v8 = vor.u32 %v1068_v7, %v951_v6  ;;  %v939_v9 = vld [vmem:[#allocation2 + $0x8] sm:$0xf]  ;;  %v1065_v10 = vld [vmem:[#allocation2 + $0x10] sm:$0xf0]  ;;  %v413_v12 = vld [vmem:[%s1377_s3] sm:$0x7] }
  0x24   : > { %577 = vmatpush.bf16.msra.mxu2 %v1000_v42  ;;  %v940_v11 = vor.u32 %v1065_v10, %v939_v9  ;;  %v415_v13 = vperm.slane %v413_v12, 0  ;;  %v416_v14 = vperm.slane %v413_v12, 1  ;;  %v417_v27 = vperm.slane %v413_v12, 2  ;;  %v1130_v33 = vld [vmem:[%s371_s17] ss:$0 sm:$0xff]  ;;  %v1094_v2 = vld [vmem:[#allocation4 + $0x38] sm:$0xff] }
  0x25   : > { %553 = vmatpush.bf16.msra.mxu0 %v968_v34  ;;  %vm616_vm2 = vcmask 64512   ;;  %v1090_v6 = vld [vmem:[#allocation4 + $0x18] sm:$0xff]  ;;  %v1089_v7 = vld [vmem:[#allocation4 + $0x10] sm:$0xff] }
  0x26   : > { %566 = vmatpush.bf16.msra.mxu1 %v972_v37 }
  0x28   : > { %578 = vmatpush.bf16.msra.mxu2 %v988_v52 }
  0x29   : > { %554 = vmatpush.bf16.msra.mxu0 %v956_v43 }
  0x2a   : > { %567 = vmatpush.bf16.msra.mxu1 %v960_v46 }
  0x2c   : > { %579 = vmatpush.bf16.msra.mxu2 %v976_v63 }
  0x2d   : > { %555 = vmatpush.bf16.msra.mxu0 %v944_v53 }
  0x2e   : > { %568 = vmatpush.bf16.msra.mxu1 %v948_v57 }
  0x30   : > { %580 = vmatpush.bf16.msra.mxu2 %v964_v5  ;;  %v1091_v5 = vld [vmem:[#allocation4 + $0x20] sm:$0xff] }
  0x31   : > { %556 = vmatpush.bf16.msra.mxu0 %v932_v0 }
  0x32   : > { %569 = vmatpush.bf16.msra.mxu1 %v936_v3  ;;  %v1093_v3 = vld [vmem:[#allocation4 + $0x30] sm:$0xff] }
  0x34   : > { %557 = vmatmul.bf16.vlgmr.msra.gmra.mxu0 %v380_v4  ;;  %581 = vmatpush.bf16.msra.mxu2 %v952_v8  ;;  %v1088_v8 = vld [vmem:[#allocation4 + $0x8] sm:$0xff] }
  0x35   : > { %570 = vmatmul.bf16.vlgmr.msra.gmra.mxu1 %v380_v4 }
  0x36   : > { %782 = vmatpush.bf16.msrb.mxu1 %v1094_v2 }
  0x38   : > { %582 = vmatpush.bf16.msra.mxu2 %v940_v11  ;;  %v1087_v11 = vld [vmem:[#allocation4] sm:$0xff] }
  0x3a   : > { %783 = vmatpush.bf16.msrb.mxu1 %v1093_v3 }
  0x3b   : > { %583 = vmatmul.bf16.vlgmr.msra.gmra.mxu2 %v380_v4  ;;  %v1092_v4 = vld [vmem:[#allocation4 + $0x28] sm:$0xff] }
  0x3e   : > { %784 = vmatpush.bf16.msrb.mxu1 %v1092_v4 }
  0x42   : > { %785 = vmatpush.bf16.msrb.mxu1 %v1091_v5 }
  0x46   : > { %786 = vmatpush.bf16.msrb.mxu1 %v1090_v6 }
  0x4a   : > { %787 = vmatpush.bf16.msrb.mxu1 %v1089_v7 }
  0x4e   : > { %788 = vmatpush.bf16.msrb.mxu1 %v1088_v8 }
  0x52   : > { %789 = vmatpush.bf16.msrb.mxu1 %v1087_v11 }
  0xb1   : > { %v558_v15 = vpop.f32.mrf.mxu0 }
  0xb2   : > { %v571_v16 = vpop.f32.mrf.mxu1  ;;  %v559_v17 = vadd.f32 %v558_v15, %v415_v13  ;;  %v1131_v15 = vld [vmem:[%s1379_s5] ss:$0 sm:$0xff] }
  0xb3   : > { %v572_v18 = vadd.f32 %v571_v16, %v416_v14 }
  0xb4   : > { %v589_v20 = vmul.f32 0.125, %v559_v17 }
  0xb5   : > { %v591_v19 = vpack.c.bf16 %v572_v18, %v572_v18 }
  0xb6   : > { %v590_v24 = vpack.c.bf16 %v589_v20, %v589_v20  ;;  %v1229_v20 = vmov 128.0  }
  0xb7   : > { %653 = vrot.lane.b32.xlu1 %v591_v19, %s1228_s18  ;;  %v601_v21 = vsel %vm596_vm0, %v591_v19, 0 }
  0xb8   : > { %610 = vmatpush.bf16.xpose.msra.mxu3 %v601_v21 }
  0xb9   : > { %v560_v22 = vpop.f32.mrf.mxu0 }
  0xba   : > { %v573_v23 = vpop.f32.mrf.mxu1 }
  0xbe   : > { %v584_v25 = vpop.f32.mrf.mxu2 }
  0xbf   : > { %650 = vrot.lane.b32.xlu1 %v590_v24, %s1228_s18  ;;  %1025 = vmatmul.msk.bf16.vlgmr.msra.gmra.mxu3 %vm596_vm0, %v590_v24  ;;  %v585_v28 = vadd.f32 %v584_v25, %v417_v27 }
  0xc1   : > { %v592_v29 = vpack.c.bf16 %v585_v28, %v585_v28 }
  0xc3   : > { %v634_v30 = vsel %vm632_vm1, %v592_v29, 0 }
  0xc4   : > { %643 = vmatpush.bf16.msrb.mxu3 %v634_v30 }
  0xc6   : > { %v586_v26 = vpop.f32.mrf.mxu2 }
 0x129   : > { %v654_v31 = vpop.permute.xlu1 %653 }
 0x12a   : > { %v659_v32 = vsel %vm596_vm0, %v654_v31, 0 }
 0x12b   : > { %668 = vmatpush.bf16.xpose.msra.mxu3 %v659_v32 }
 0x131   : > { %v651_v49 = vpop.permute.xlu1 %650 }
 0x142   : > { %v612_v34 = vpop.f32.mrf.mxu3 }
 0x143   : > { %v613_v35 = vadd.f32 %v1130_v33, %v612_v34 }
 0x145   : > { %v617_v36 = vsel %vm616_vm2, %v613_v35, -inf }
 0x146   : > { %618 = vmax.xlane.f32.xlu0 %v617_v36 }
 0x14a   : > { %v614_v37 = vpop.f32.mrf.mxu3 }
 0x1b9   : > { %v619_v38 = vpop.xlane.xlu0 %618 }
 0x1ba   : > { %v620_v39 = vsub.f32 %v613_v35, %v619_v38 }
 0x1bc   : > { %v621_v40 = vmul.f32 1.442695, %v620_v39  ;;  %v1132_v39 = vld [vmem:[%s1381_s7] ss:$0 sm:$0xff] }
 0x1be   : > { %1134 = vpow2.f32 %v621_v40 }
 0x1c4   : > { %v1135_v41 = vpop.eup %1134 }
 0x1c5   : > { %v623_v42 = vsel %vm616_vm2, %v1135_v41, 0.0 }
 0x1c6   : > { %624 = vadd.xlane.f32.xlu0 %v623_v42 }
 0x1da   : > { %687 = vrot.lane.b32.xlu0 %v592_v29, %s1228_s18 }
 0x239   : > { %v625_v43 = vpop.xlane.xlu0 %624 }
 0x23a   : > { %1136 = vrcp.f32 %v625_v43 }
 0x240   : > { %v1137_v44 = vpop.eup %1136 }
 0x241   : > { %v627_v45 = vmul.f32 %v1137_v44, %v1135_v41  ;;  %v1133_v41 = vld [vmem:[%s1382_s8] ss:$0 sm:$0xff] }
 0x243   : > { %v628_v46 = vpack.c.bf16 %v627_v45, %v627_v45 }
 0x245   : > { %1026 = vmatmul.msk.bf16.vlgmr.msrb.gmra.mxu3 %vm616_vm2, %v628_v46 }
 0x24c   : > { %v688_v47 = vpop.permute.xlu0 %687 }
 0x24d   : > { %v693_v48 = vsel %vm632_vm1, %v688_v47, 0 }
 0x24e   : > { %702 = vmatpush.bf16.msrb.mxu0 %v693_v48 }
 0x255   : > { %1027 = vmatmul.msk.bf16.vlgmr.msra.gmra.mxu3 %vm596_vm0, %v651_v49 }
 0x2c8   : > { %v645_v50 = vpop.f32.mrf.mxu3 }
 0x2d0   : > { %v647_v51 = vpop.f32.mrf.mxu3 }
 0x2d8   : > { %v670_v52 = vpop.f32.mrf.mxu3 }
 0x2d9   : > { %v671_v53 = vadd.f32 %v1130_v33, %v670_v52 }
 0x2db   : > { %v674_v54 = vsel %vm616_vm2, %v671_v53, -inf }
 0x2dc   : > { %675 = vmax.xlane.f32.xlu2 %v674_v54 }
 0x2e0   : > { %v672_v55 = vpop.f32.mrf.mxu3 }
 0x34f   : > { %v676_v56 = vpop.xlane.xlu2 %675 }
 0x350   : > { %v677_v57 = vsub.f32 %v671_v53, %v676_v56 }
 0x352   : > { %v678_v58 = vmul.f32 1.442695, %v677_v57 }
 0x354   : > { %1138 = vpow2.f32 %v678_v58 }
 0x35a   : > { %v1139_v59 = vpop.eup %1138 }
 0x35b   : > { %v680_v60 = vsel %vm616_vm2, %v1139_v59, 0.0 }
 0x35c   : > { %681 = vadd.xlane.f32.xlu2 %v680_v60 }
 0x3cf   : > { %v682_v61 = vpop.xlane.xlu2 %681 }
 0x3d0   : > { %1140 = vrcp.f32 %v682_v61 }
 0x3d1   : > { %1142 = vrcp.f32 %v1229_v20 }
 0x3d6   : > { %v1141_v63 = vpop.eup %1140 }
 0x3d7   : > { %v684_v0 = vmul.f32 %v1141_v63, %v1139_v59  ;;  %v1143_v21 = vpop.eup %1142 }
 0x3d8   : > { %v801_v22 = vmul.f32 128.0, %v1143_v21  ;;  %vm805_vm3 = vweird.f32 %v1143_v21 }
 0x3d9   : > { %v685_v1 = vpack.c.bf16 %v684_v0, %v684_v0 }
 0x3da   : > { %v802_v23 = vsub.f32 1.0, %v801_v22 }
 0x3db   : > { %1028 = vmatmul.msk.bf16.vlgmr.msrb.gmra.mxu0 %vm616_vm2, %v685_v1 }
 0x3dc   : > { %v803_v24 = vmul.f32 %v1143_v21, %v802_v23 }
 0x3de   : > { %v804_v25 = vadd.f32 %v1143_v21, %v803_v24 }
 0x3e0   : > { %v806_v26 = vsel %vm805_vm3, %v1143_v21, %v804_v25 }
 0x458   : > { %v704_v9 = vpop.f32.mrf.mxu0 }
 0x459   : > { %709 = vrot.lane.b32.xlu1 %v704_v9, %s1228_s18 }
 0x460   : > { %v706_v10 = vpop.f32.mrf.mxu0 }
 0x4cb   : > { %v710_v12 = vpop.permute.xlu1 %709 }
 0x4cc   : > { %v712_v13 = vsel %vm596_vm0, %v645_v50, %v710_v12 }
 0x4cd   : > { %v713_v14 = vpack.c.bf16 %v712_v13, %v712_v13 }
 0x4cf   : > { %790 = vmatmul.bf16.vlgmr.msrb.gmra.mxu1 %v713_v14 }
 0x54c   : > { %v791_v16 = vpop.f32.mrf.mxu1 }
 0x54d   : > { %v792_v17 = vadd.f32 %v1131_v15, %v791_v16 }
 0x54f   : > { %v795_v18 = vadd.f32 %v792_v17, %v1328_v62 }
 0x551   : > { %798 = vadd.xlane.f32.xlu2 %v795_v18 }
 0x554   : > { %v793_v19 = vpop.f32.mrf.mxu1 }
 0x5c4   : > { %v799_v27 = vpop.xlane.xlu2 %798 }
 0x5c5   : > { %v807_v28 = vmul.f32 %v806_v26, %v799_v27 }
 0x5c7   : > { %v808_v29 = vsub.f32 %v795_v18, %v807_v28 }
 0x5c9   : > { %v809_v30 = vmul.f32 %v808_v29, %v808_v29 }
 0x5cb   : > { %810 = vadd.xlane.f32.xlu1 %v809_v30 }
 0x63e   : > { %v811_v31 = vpop.xlane.xlu1 %810 }
 0x63f   : > { %v812_v32 = vmul.f32 %v811_v31, %v806_v26 }
 0x641   : > { %v813_v33 = vadd.f32 1e-05, %v812_v32 }
 0x643   : > { %1144 = vrsqrt.f32 %v813_v33  ;;  %vm820_vm5 = vweird.f32 %v813_v33 }
 0x649   : > { %v1145_v62 = vpop.eup %1144 }
 0x64a   : > { %v815_v34 = vmul.f32 %v1145_v62, %v813_v33  ;;  %vm821_vm4 = vweird.f32 %v1145_v62 }
 0x64b   : > { %vm822_vm6 = vmor %vm820_vm5, %vm821_vm4 }
 0x64c   : > { %v816_v35 = vmul.f32 %v1145_v62, %v815_v34 }
 0x64e   : > { %v817_v36 = vmul.f32 0.5, %v816_v35 }
 0x650   : > { %v818_v37 = vsub.f32 1.5, %v817_v36 }
 0x652   : > { %v819_v38 = vmul.f32 %v1145_v62, %v818_v37 }
 0x654   : > { %v823_v40 = vsel %vm822_vm6, %v1145_v62, %v819_v38 }
 0x655   : > { %v824_v42 = vmul.f32 %v823_v40, %v808_v29 }
 0x657   : > { %v828_v43 = vmul.f32 %v1132_v39, %v824_v42 }
 0x659   : > { %v832_v44 = vadd.f32 %v1133_v41, %v828_v43 }
 0x65b   : > { %833 = vst [vmem:[%s375_s28] sm:$0xff] %v832_v44 }
 0x65c PF: > { %s21_s30 = sadd.s32 1, %s1220_s30  }
 0x65d   : > { %p18_p7 = scmp.ge.s32.totalorder %s21_s30, 4  }
 0x65f   :  { %20 = sbr.rel (!%p18_p7) target bundleno = 2 (0x2), region = 98 }
 0x664   :  { %853 = vsyncpa [#allocation3], 1 }
 0x665   :  { %855 = vsyncpa [#allocation3 + $0x1], 1 }
 0x666   :  { %856 = vsyncpa [#allocation5], 1 }

</bundles_post_ra>
